<compile_context>
chip_gen: v7x
topology: tpu7x:2x2x1
jax: 0.10.0
libtpu: 0.0.40
codegen_flags: <defaults>
</compile_context>

<pallas_src>
import jax
import jax.numpy as jnp
from jax.experimental import pallas as pl
from jax.experimental.pallas import tpu as pltpu


FEAT_DIM = 1280  # EfficientNet-B0 feature width


# ---------------------------------------------------------------------------
# Fused Pallas kernel: K-tiled matmul + bias + SiLU + fc-head reduction
# ---------------------------------------------------------------------------
def _fused_siamese_kernel(x_ref, w_ref, b_ref, wfc_ref, o_ref, acc_ref):
    """grid = (feature_tile j [parallel], k_tile k [arbitrary/reduction]).

    acc accumulates x @ w[:, j-tile] in f32 over k; at the last k step the
    epilogue applies bias + SiLU and reduces against the fc-head weight row,
    emitting a per-feature-tile partial score of shape (1, N, 1).
    """
    k = pl.program_id(1)

    @pl.when(k == 0)
    def _():
        acc_ref[...] = jnp.zeros_like(acc_ref)

    acc_ref[...] += jnp.dot(
        x_ref[...], w_ref[...], preferred_element_type=jnp.float32
    )

    @pl.when(k == pl.num_programs(1) - 1)
    def _():
        z = acc_ref[...] + b_ref[...]          # (N, tn) f32
        h = z * jax.nn.sigmoid(z)              # SiLU (sigmoid on EUP)
        # Fused fc head: VPU multiply + lane reduction -> (N, 1)
        partial = jnp.sum(h * wfc_ref[...], axis=-1, keepdims=True)
        o_ref[...] = partial[None].astype(o_ref.dtype)   # (1, N, 1)


def _pick_tk(d, target=2048):
    """Largest multiple of 128 that divides d and is <= target (else d)."""
    if d <= target:
        return d
    for tk in range(target - (target % 128), 127, -128):
        if d % tk == 0:
            return tk
    return d


def fused_siamese_scores(x_flat, w_bb, b_bb, w_fc_row, *, n_ftiles=2):
    """x_flat: (N, D) bf16, w_bb: (D, 1280) bf16, b_bb: (1, 1280) f32,
    w_fc_row: (1, 1280) f32  ->  raw scores (N, 1) f32 (before fc bias)."""
    n, d = x_flat.shape
    tk = _pick_tk(d)
    assert d % tk == 0
    assert FEAT_DIM % n_ftiles == 0
    tn = FEAT_DIM // n_ftiles
    kt = d // tk

    partials = pl.pallas_call(
        _fused_siamese_kernel,
        out_shape=jax.ShapeDtypeStruct((n_ftiles, n, 1), jnp.float32),
        grid_spec=pltpu.PrefetchScalarGridSpec(
            num_scalar_prefetch=0,
            grid=(n_ftiles, kt),
            in_specs=[
                pl.BlockSpec((n, tk), lambda j, k: (0, k)),     # x tile (bf16)
                pl.BlockSpec((tk, tn), lambda j, k: (k, j)),    # weight tile (bf16)
                pl.BlockSpec((1, tn), lambda j, k: (0, j)),     # backbone bias
                pl.BlockSpec((1, tn), lambda j, k: (0, j)),     # fc weight row
            ],
            # Per-feature-tile partial scores; the block spans the full (N, 1)
            # trailing dims so it is layout-legal and stays resident across K.
            out_specs=pl.BlockSpec((1, n, 1), lambda j, k: (j, 0, 0)),
            scratch_shapes=[pltpu.VMEM((n, tn), jnp.float32)],
        ),
        compiler_params=pltpu.CompilerParams(
            dimension_semantics=("parallel", "arbitrary"),
        ),
    )(x_flat, w_bb, b_bb, w_fc_row)

    return jnp.sum(partials, axis=0)  # (N, 1)


# ---------------------------------------------------------------------------
# Module-level forward (mirrors SiameseNetwork.forward)
# ---------------------------------------------------------------------------
def siamese_forward(img1, img2, params):
    """Returns (score1, score2), each (B, 1) f32."""
    b = img1.shape[0]
    # Shared backbone + shared fc -> stack both images on the batch axis.
    x = jnp.concatenate([img1, img2], axis=0)                 # (2B, C, H, W)
    x_flat = x.reshape(2 * b, -1).astype(jnp.bfloat16)        # (2B, D) bf16
    scores = fused_siamese_scores(
        x_flat, params["w_bb"], params["b_bb"], params["w_fc_row"]
    )
    scores = scores + params["b_fc"]                          # fc bias, (2B, 1)
    return scores[:b], scores[b:]


def reference_forward(img1, img2, params):
    """Pure-JAX f32 reference matching the kernel's math (for a sanity check)."""
    b = img1.shape[0]
    x = jnp.concatenate([img1, img2], axis=0).reshape(2 * b, -1)
    x = x.astype(jnp.bfloat16).astype(jnp.float32)
    w = params["w_bb"].astype(jnp.float32)
    z = x @ w + params["b_bb"]
    h = z * jax.nn.sigmoid(z)
    s = h @ params["w_fc_row"].T + params["b_fc"]
    return s[:b], s[b:]


def init_params(key, d):
    k1, k2, k3, k4 = jax.random.split(key, 4)
    return {
        # Backbone weight stored/streamed bf16 (MXU-native, half the HBM bytes).
        "w_bb": (jax.random.normal(k1, (d, FEAT_DIM), jnp.float32)
                 * (1.0 / d) ** 0.5).astype(jnp.bfloat16),
        "b_bb": jax.random.normal(k2, (1, FEAT_DIM), jnp.float32) * 0.01,
        # nn.Linear(1280, 1): torch weight (1, 1280) kept as a row so the
        # fused head is a VPU multiply + lane reduce.
        "w_fc_row": jax.random.normal(k3, (1, FEAT_DIM), jnp.float32)
                    * (1.0 / FEAT_DIM) ** 0.5,
        "b_fc": jax.random.normal(k4, (1, 1), jnp.float32) * 0.01,
    }


if __name__ == "__main__":
    key = jax.random.PRNGKey(0)
    kx1, kx2, kp = jax.random.split(key, 3)

    B, C, H, W = 2, 3, 32, 32          # small synthetic image shape (NCHW)
    D = C * H * W                      # 3072 -> tk = 1536, kt = 2

    img1 = jax.random.normal(kx1, (B, C, H, W), jnp.float32)
    img2 = jax.random.normal(kx2, (B, C, H, W), jnp.float32)
    params = init_params(kp, D)

    fwd = jax.jit(siamese_forward)
    score1, score2 = fwd(img1, img2, params)
    jax.block_until_ready((score1, score2))

    assert score1.shape == (B, 1) and score2.shape == (B, 1)
    assert score1.dtype == jnp.float32 and score2.dtype == jnp.float32
    assert bool(jnp.all(jnp.isfinite(score1))) and bool(jnp.all(jnp.isfinite(score2)))

    # Numerical sanity check against a pure-JAX reference (generous tolerance
    # for bf16 streaming / reduction-order differences).
    ref1, ref2 = reference_forward(img1, img2, params)
    assert bool(jnp.allclose(score1, ref1, rtol=5e-2, atol=5e-2))
    assert bool(jnp.allclose(score2, ref2, rtol=5e-2, atol=5e-2))

    print("KERNEL_OK")
</pallas_src>

<mosaic_0001>
module attributes {stable_mosaic.version = 11 : i64} {
  func.func @_fused_siamese_kernel(%arg0: i32, %arg1: i32, %arg2: memref<4x1536xbf16, #tpu.memory_space<vmem>>, %arg3: memref<1536x640xbf16, #tpu.memory_space<vmem>>, %arg4: memref<1x640xf32, #tpu.memory_space<vmem>>, %arg5: memref<1x640xf32, #tpu.memory_space<vmem>>, %arg6: memref<1x4x1xf32, #tpu.memory_space<vmem>>, %arg7: memref<4x640xf32, #tpu.memory_space<vmem>>) attributes {dimension_semantics = [#tpu.dimension_semantics<parallel>, #tpu.dimension_semantics<arbitrary>], iteration_bounds = array<i64: 2, 2>, scalar_prefetch = 0 : i64, scratch_operands = 1 : i64, tpu.core_type = #tpu.core_type<tc>, window_params = [{transform_indices = @transform_0, window_bounds = array<i64: 4, 1536>}, {transform_indices = @transform_1, window_bounds = array<i64: 1536, 640>}, {transform_indices = @transform_2, window_bounds = array<i64: 1, 640>}, {transform_indices = @transform_3, window_bounds = array<i64: 1, 640>}, {transform_indices = @transform_4, window_bounds = array<i64: 1, 4, 1>}]} {
    %c0_i32 = arith.constant 0 : i32
    %0 = arith.cmpi eq, %arg1, %c0_i32 : i32
    %1 = arith.extui %0 : i1 to i32
    %c0_i32_0 = arith.constant 0 : i32
    %2 = arith.cmpi ne, %1, %c0_i32_0 : i32
    scf.if %2 {
      %cst_9 = arith.constant 0.000000e+00 : f32
      %12 = vector.broadcast %cst_9 : f32 to vector<4x640xf32>
      %c0_10 = arith.constant 0 : index
      %c0_11 = arith.constant 0 : index
      %13 = vector.load %arg7[%c0_10, %c0_11] : memref<4x640xf32, #tpu.memory_space<vmem>>, vector<4x640xf32>
      tpu.vector_store %arg7[%c0_10, %c0_11], %12 {strides = array<i32>} : memref<4x640xf32, #tpu.memory_space<vmem>>, vector<4x640xf32>,
    } else {
    }
    %c0 = arith.constant 0 : index
    %c0_1 = arith.constant 0 : index
    %3 = vector.load %arg7[%c0, %c0_1] : memref<4x640xf32, #tpu.memory_space<vmem>>, vector<4x640xf32>
    %c0_2 = arith.constant 0 : index
    %c0_3 = arith.constant 0 : index
    %4 = vector.load %arg2[%c0_2, %c0_3] : memref<4x1536xbf16, #tpu.memory_space<vmem>>, vector<4x1536xbf16>
    %c0_4 = arith.constant 0 : index
    %c0_5 = arith.constant 0 : index
    %5 = vector.load %arg3[%c0_4, %c0_5] : memref<1536x640xbf16, #tpu.memory_space<vmem>>, vector<1536x640xbf16>
    %cst = arith.constant dense<0.000000e+00> : vector<4x640xf32>
    %6 = tpu.matmul %4, %5, %cst {dimension_numbers = #tpu.dot_dimension_numbers<[1], [0], [0], [1], [0, 0, 1, 1], [], []>} : vector<4x1536xbf16>, vector<1536x640xbf16>, vector<4x640xf32> -> vector<4x640xf32>
    %7 = arith.addf %3, %6 : vector<4x640xf32>
    %c0_6 = arith.constant 0 : index
    %c0_7 = arith.constant 0 : index
    %8 = vector.load %arg7[%c0_6, %c0_7] : memref<4x640xf32, #tpu.memory_space<vmem>>, vector<4x640xf32>
    tpu.vector_store %arg7[%c0_6, %c0_7], %7 {strides = array<i32>} : memref<4x640xf32, #tpu.memory_space<vmem>>, vector<4x640xf32>,
    %c1_i32 = arith.constant 1 : i32
    %9 = arith.cmpi eq, %arg1, %c1_i32 : i32
    %10 = arith.extui %9 : i1 to i32
    %c0_i32_8 = arith.constant 0 : i32
    %11 = arith.cmpi ne, %10, %c0_i32_8 : i32
    scf.if %11 {
      %c0_9 = arith.constant 0 : index
      %c0_10 = arith.constant 0 : index
      %12 = vector.load %arg7[%c0_9, %c0_10] : memref<4x640xf32, #tpu.memory_space<vmem>>, vector<4x640xf32>
      %c0_11 = arith.constant 0 : index
      %c0_12 = arith.constant 0 : index
      %13 = vector.load %arg4[%c0_11, %c0_12] : memref<1x640xf32, #tpu.memory_space<vmem>>, vector<1x640xf32>
      %14 = vector.broadcast %13 : vector<1x640xf32> to vector<4x640xf32>
      %15 = arith.addf %12, %14 : vector<4x640xf32>
      %16 = arith.negf %15 : vector<4x640xf32>
      %17 = math.exp %16 : vector<4x640xf32>
      %cst_13 = arith.constant 1.000000e+00 : f32
      %18 = vector.broadcast %cst_13 : f32 to vector<4x640xf32>
      %19 = arith.addf %18, %17 : vector<4x640xf32>
      %20 = arith.divf %18, %19 : vector<4x640xf32>
      %21 = arith.mulf %15, %20 : vector<4x640xf32>
      %c0_14 = arith.constant 0 : index
      %c0_15 = arith.constant 0 : index
      %22 = vector.load %arg5[%c0_14, %c0_15] : memref<1x640xf32, #tpu.memory_space<vmem>>, vector<1x640xf32>
      %23 = vector.broadcast %22 : vector<1x640xf32> to vector<4x640xf32>
      %24 = arith.mulf %21, %23 : vector<4x640xf32>
      %cst_16 = arith.constant dense<0.000000e+00> : vector<4xf32>
      %25 = vector.multi_reduction <add>, %24, %cst_16 [1] : vector<4x640xf32> to vector<4xf32>
      %26 = vector.shape_cast %25 : vector<4xf32> to vector<4x1xf32>
      %27 = vector.shape_cast %26 : vector<4x1xf32> to vector<1x4x1xf32>
      %c0_17 = arith.constant 0 : index
      %c0_18 = arith.constant 0 : index
      %c0_19 = arith.constant 0 : index
      %28 = vector.load %arg6[%c0_17, %c0_18, %c0_19] : memref<1x4x1xf32, #tpu.memory_space<vmem>>, vector<1x4x1xf32>
      tpu.vector_store %arg6[%c0_17, %c0_18, %c0_19], %27 {strides = array<i32>} : memref<1x4x1xf32, #tpu.memory_space<vmem>>, vector<1x4x1xf32>,
    } else {
    }
    return
  }
  func.func @transform_0(%arg0: i32, %arg1: i32) -> (i32, i32) {
    %c0_i32 = arith.constant 0 : i32
    %c0_i32_0 = arith.constant 0 : i32
    return %c0_i32, %arg1 : i32, i32
  }
  func.func @transform_1(%arg0: i32, %arg1: i32) -> (i32, i32) {
    %c0_i32 = arith.constant 0 : i32
    return %arg1, %arg0 : i32, i32
  }
  func.func @transform_2(%arg0: i32, %arg1: i32) -> (i32, i32) {
    %c0_i32 = arith.constant 0 : i32
    %c0_i32_0 = arith.constant 0 : i32
    return %c0_i32, %arg0 : i32, i32
  }
  func.func @transform_3(%arg0: i32, %arg1: i32) -> (i32, i32) {
    %c0_i32 = arith.constant 0 : i32
    %c0_i32_0 = arith.constant 0 : i32
    return %c0_i32, %arg0 : i32, i32
  }
  func.func @transform_4(%arg0: i32, %arg1: i32) -> (i32, i32, i32) {
    %c0_i32 = arith.constant 0 : i32
    %c0_i32_0 = arith.constant 0 : i32
    %c0_i32_1 = arith.constant 0 : i32
    return %arg0, %c0_i32, %c0_i32_0 : i32, i32, i32
  }
}

</mosaic_0001>

<bundles_post_ra>
// kernel: siamese_forward.1
= control target key start
LH: loop header
LB: loop body
LE: loop exit
PB: predicated region body
PF: predicated region fallthrough
CT: control target
= control target key end

     0   :  { %s7057_s0 = inlined_call_operand.vmem [shape: bf16[4,3072], index: 0, kind: input, shape index: {}]   ;;  %s7058_s1 = inlined_call_operand.hbm [shape: bf16[3072,1280], index: 1, kind: input, shape index: {}]   ;;  %s7059_s2 = inlined_call_operand.hbm [shape: f32[1,1280], index: 2, kind: input, shape index: {}]   ;;  %s7060_s3 = inlined_call_operand.hbm [shape: f32[1,1280], index: 3, kind: input, shape index: {}]   ;;  %s7061_s4 = inlined_call_operand.vmem [shape: f32[2,4,1], index: 4, kind: output, shape index: {}]  }
   0x1   :  { %7071 = sst [smem:[#allocation16_spill]] %s7059_s2 }
   0x2   :  { %9 = vsyncpa [#allocation4], 0 }
   0x3   :  { %11 = vsyncpa [#allocation4 + $0x1], 0 }
   0x4   :  { %12 = vsyncpa [#allocation6], 0 }
   0x5   :  { %14 = vsyncpa [#allocation6 + $0x1], 0  ;;  %s6166_s15 = smov 0   ;;  %s6168_s16 = smov 0  }
   0x6   :  { %s6170_s17 = smov 0   ;;  %s6172_s18 = smov 0  }
   0x7   :  { %s6174_s19 = smov 0   ;;  %s6176_s20 = smov 0  }
   0x8   :  { %s6178_s21 = smov 0   ;;  %s6180_s22 = smov 0  }
   0x9   :  { %s6182_s23 = smov 0   ;;  %s6184_s24 = smov 0  }
   0xa   :  { %s6186_s25 = smov 0  }
   0xb LB: > { %7072 = sst [smem:[#allocation10_spill]] %s6099_s17  ;;  %s7062_s26 = sadd.s32 4294967295, %s6131_s25   ;;  %s6131_s25 = sphi %s6186_s25, %s20_s25   ;;  %s6127_s24 = sphi %s6184_s24, %s7108_s24   ;;  %s6123_s23 = sphi %s6182_s23, %s7107_s23   ;;  %s6119_s22 = sphi %s6180_s22, %s7106_s22   ;;  %s6115_s21 = sphi %s6178_s21, %s7105_s21   ;;  %s6111_s20 = sphi %s6176_s20, %s7098_s20   ;;  %s6107_s19 = sphi %s6174_s19, %s7104_s19   ;;  %s6103_s18 = sphi %s6172_s18, %s7103_s18   ;;  %s6099_s17 = sphi %s6170_s17, %s7096_s17   ;;  %s6095_s16 = sphi %s6168_s16, %s7102_s16   ;;  %s6091_s15 = sphi %s6166_s15, %s7101_s15  }
   0xc   : > { %7073 = sst [smem:[#allocation11_spill]] %s6111_s20  ;;  %s29_s27 = sadd.s32 1, %s6123_s23 }
   0xd   : > { %p30_p0 = scmp.ge.s32.totalorder %s29_s27, 2  ;;  %s32_s28 = sadd.s32 1, %s6127_s24 }
   0xe   : > { %s67_s29 = sadd.s32 1, %s6111_s20  ;;  %p74_p1 = scmp.ne.s32.totalorder %s6111_s20, %s6107_s19 }
   0xf   : > { %s7110_s27 = smov (%p30_p0, %s29_s27), 0  ;;  %s7112_s28 = smov (!%p30_p0, %s32_s28), %s6127_s24 }
  0x10   : > { %7074 = sst [smem:[#allocation12_spill]] %s7110_s27  ;;  %s62_s30 = ssub.s32 %s6123_s23, %s7110_s27 }
  0x11   : > { %p75_p2 = scmp.eq.s32.totalorder %s6131_s25, 0  ;;  %p34_p3 = scmp.ge.s32.totalorder %s7112_s28, 2 }
  0x12   : > { %p80_p4 = scmp.ne.s32.totalorder %s6107_s19, %s6103_s18  ;;  %p6240_p6 = scmp.eq.s32.totalorder %s7062_s26, 0 }
  0x13   : > { %p6234_p5 = por %p75_p2, %p74_p1  ;;  %s7114_s28 = smov (%p34_p3, %s7112_s28), 0 }
  0x14   : > { %7077 = sst [smem:[#allocation13_spill]] %s7114_s28  ;;  %p6248_p7 = por %p6240_p6, %p80_p4 }
  0x15   : > { %s93_s8 = sadd.s32 1, %s6099_s17  ;;  %s63_s9 = ssub.s32 %s6127_s24, %s7114_s28 }
  0x16   : > { %s7078_s7 = scalar_select %p6248_p7, 1, 0 }
  0x17   : > { %p100_p8 = scmp.ne.s32.totalorder %s6099_s17, %s6095_s16  ;;  %s64_s10 = sor.u32 %s63_s9, %s62_s30 }
  0x18   : > { %p91_p9 = scmp.eq.s32.totalorder %s63_s9, 0  ;;  %p65_p10 = scmp.eq.s32.totalorder %s64_s10, 0 }
  0x19   : > { %p102_p11 = por %p100_p8, %p75_p2  ;;  %p106_p12 = scmp.ne.s32.totalorder %s6095_s16, %s6091_s15 }
  0x1a   : > { %s6260_s11 = scalar_select %p91_p9, %s6099_s17, %s93_s8  }
  0x1b   : > { %s6263_s12 = scalar_select %p65_p10, %s6111_s20, %s67_s29  }
  0x1c   : > { %7079 = sst [smem:[#allocation14_spill]] %s6260_s11  ;;  %p5165_p13 = scmp.lt.s32.totalorder %s6131_s25, 4 }
  0x1d   : > { %7080 = sst [smem:[#allocation15_spill]] %s6263_s12  ;;  %p6270_p0 = por %p106_p12, %p6240_p6 }
  0x1e   : > { %s215_s14 = sand.u32 1, %s6131_s25   ;;  %p6277_p1 = pnand %p5165_p13, %p6234_p5 }
  0x1f   : > { %s7081_s13 = scalar_select %p6270_p0, 1, 0 }
  0x20   : > { %s217_s30 = sand.u32 1, %s6099_s17   ;;  %s7063_s9 = smul.u32 80, %s6127_s24 }
  0x21   : > { %s6283_s8 = smul.u32 5, %s217_s30  ;;  %s7083_s2 = sld [smem:[#allocation16_spill]] }
  0x22   : > { %p6292_p2 = pnand %p5165_p13, %p102_p11  ;;  %s6301_s29 = scalar_lea.sflag [#allocation6], %s215_s14 }
  0x23   : > { %s219_s6 = scalar_lea.vmem [#allocation5], %s6283_s8 }
  0x24   : > { %s227_s30 = sshll.u32 %s219_s6, 4  ;;  %p7070_p6 = pneg %p6292_p2  ;;  %s6298_s30 = int_to_ptr.vmem [resolvable:$true] %s227_s30 }
  0x27   : > { %s6290_s15 = scalar_lea.hbm %s7083_s2, %s7063_s9  ;;  %s5952_s28 = scalar_lea.hbm %s7083_s2, 160 }
  0x28   : > { %s5947_s10 = scalar_lea.hbm %s6290_s15, 80  ;;  %p5953_p10 = scmp.lt.u32.totalorder %s6290_s15, %s7083_s2 }
  0x29   : > { %p5948_p5 = scmp.ne.s32.totalorder %s6290_s15, %s5947_s10  ;;  %p5954_p11 = scmp.lt.u32.totalorder %s5952_s28, %s5947_s10 }
  0x2a   : > { %p5956_p13 = scmp.lt.u32.totalorder %s5947_s10, %s6290_s15 }
  0x2b   : > { %p5950_p8 = pnand %p7070_p6, %p5948_p5  ;;  %p5955_p12 = por %p5954_p11, %p5953_p10 }
  0x2d   : > { %p5951_p9 = pneg %p5950_p8  ;;  %p5957_p3 = por %p5956_p13, %p5955_p12 }
  0x2f   : > { %p5958_p4 = pnand %p5957_p3, %p5951_p9 }
  0x31   : > { %5961 = shalt.err (!%p5958_p4)
}
  0x32   : > { %s5962_s14 = scalar_lea.vmem %s6298_s30, 80  ;;  %s6133_s26 = smov [#allocation5]  }
  0x33   : > { %p5963_p5 = scmp.ne.s32.totalorder %s6298_s30, %s5962_s14  ;;  %s5967_s9 = sshll.u32 %s6133_s26, 4  ;;  %s5968_s9 = int_to_ptr.vmem [resolvable:$false] %s5967_s9 }
  0x34   : > { %s5969_s27 = scalar_lea.vmem %s5968_s9, 160  ;;  %p5970_p7 = scmp.lt.s32.totalorder %s6298_s30, %s5968_s9 }
  0x35   : > { %p5965_p8 = pnand %p5963_p5, %p7070_p6  ;;  %p5971_p10 = scmp.lt.s32.totalorder %s5969_s27, %s5962_s14 }
  0x37   : > { %p5966_p0 = pneg %p5965_p8  ;;  %p5972_p11 = por %p5971_p10, %p5970_p7 }
  0x39   : > { %p5973_p12 = pnand %p5972_p11, %p5966_p0 }
  0x3b   : > { %5976 = shalt.err (!%p5973_p12)
}
  0x3c   : > { %5161 = dma.hbm_to_vmem [thread:$0]  (!%p6292_p2), %s6290_s15, 80, %s6298_s30, %s6301_s29  }
  0x3d   : > { %p7085_p3 = scmp.lt.s32.totalorder %s6131_s25, 5  ;;  %p7086_p4 = scmp.ge.s32.totalorder %s6131_s25, 1 }
  0x3e   : > { %s191_s12 = sand.u32 1, %s6111_s20   ;;  %s197_s10 = smul.u32 5, %s6127_s24 }
  0x3f   : > { %p6333_p9 = pnand %p7086_p4, %p7085_p3  ;;  %s5143_s6 = smul.u32 3840, %s191_s12 }
  0x40   : > { %s5166_s14 = smul.u32 1920, %s6123_s23  ;;  %s6347_s30 = scalar_lea.sflag [#allocation4], %s191_s12 }
  0x41   : > { %s7087_s28 = scalar_select %p6333_p9, 1, 0 }
  0x42   : > { %s195_s26 = scalar_lea.vmem [#allocation3], %s5143_s6  ;;  %s202_s27 = sadd.s32 %s5166_s14, %s197_s10 }
  0x43   : > { %s205_s9 = sshll.u32 %s195_s26, 4  ;;  %s4476_s2 = sshll.u32 %s202_s27, 6  ;;  %s6340_s9 = int_to_ptr.vmem [resolvable:$true] %s205_s9 }
  0x44   : > { %s6345_s15 = scalar_lea.hbm %s7058_s1, %s4476_s2  ;;  %p5979_p0 = pneg %p6277_p1 }
  0x45   : > { %s5977_s20 = scalar_lea.hbm %s6345_s15, 61440  ;;  %s5982_s17 = scalar_lea.hbm %s7058_s1, 245760 }
  0x46   : > { %p5978_p7 = scmp.ne.s32.totalorder %s6345_s15, %s5977_s20  ;;  %p5983_p8 = scmp.lt.u32.totalorder %s6345_s15, %s7058_s1 }
  0x47   : > { %p5984_p10 = scmp.lt.u32.totalorder %s5982_s17, %s5977_s20  ;;  %p5986_p12 = scmp.lt.u32.totalorder %s5977_s20, %s6345_s15 }
  0x48   : > { %p5980_p13 = pnand %p5979_p0, %p5978_p7 }
  0x49   : > { %p5985_p11 = por %p5984_p10, %p5983_p8 }
  0x4a   : > { %p5981_p5 = pneg %p5980_p13 }
  0x4b   : > { %p5987_p3 = por %p5986_p12, %p5985_p11 }
  0x4d   : > { %p5988_p4 = pnand %p5987_p3, %p5981_p5 }
  0x4f   : > { %5991 = shalt.err (!%p5988_p4)
}
  0x50   : > { %s5992_s12 = scalar_lea.vmem %s6340_s9, 61440  ;;  %s6134_s14 = smov [#allocation3]  }
  0x51   : > { %p5993_p7 = scmp.ne.s32.totalorder %s6340_s9, %s5992_s12  ;;  %s5997_s26 = sshll.u32 %s6134_s14, 4  ;;  %s5998_s26 = int_to_ptr.vmem [resolvable:$false] %s5997_s26 }
  0x52   : > { %s5999_s27 = scalar_lea.vmem %s5998_s26, 122880  ;;  %p6000_p9 = scmp.lt.s32.totalorder %s6340_s9, %s5998_s26 }
  0x53   : > { %p5995_p13 = pnand %p5993_p7, %p5979_p0  ;;  %p6001_p8 = scmp.lt.s32.totalorder %s5999_s27, %s5992_s12 }
  0x55   : > { %p5996_p6 = pneg %p5995_p13  ;;  %p6002_p10 = por %p6001_p8, %p6000_p9 }
  0x57   : > { %p6003_p11 = pnand %p6002_p10, %p5996_p6 }
  0x59   : > { %6006 = shalt.err (!%p6003_p11)
}
  0x5a   : > { %s6135_s20 = smov 640   ;;  %s6136_s6 = smov 320  }
  0x5b   : > { %s6137_s10 = smov 20   ;;  %s7088_s17 = smul.u32 80, %s6127_s24 }
  0x5c   : > { %5158 = dma.hbm_to_vmem [thread:$0]  (!%p6277_p1), %s6345_s15, 61440, %s6340_s9, %s6347_s30, %s6135_s20, %s6136_s6, %s6137_s10  }
  0x5d   : > { %s6380_s12 = scalar_lea.hbm %s7060_s3, %s7088_s17  ;;  %s238_s14 = scalar_lea.vmem [#allocation7], %s6283_s8 }
  0x5e   : > { %s246_s26 = sshll.u32 %s238_s14, 4  ;;  %s6007_s27 = scalar_lea.hbm %s6380_s12, 80  ;;  %s247_s26 = int_to_ptr.vmem [resolvable:$true] %s246_s26 }
  0x5f   : > { %p6008_p6 = scmp.ne.s32.totalorder %s6380_s12, %s6007_s27  ;;  %p7089_p9 = pneg %p6292_p2 }
  0x60   : > { %s6012_s15 = scalar_lea.hbm %s7060_s3, 160  ;;  %p6013_p1 = scmp.lt.u32.totalorder %s6380_s12, %s7060_s3 }
  0x61   : > { %p6010_p0 = pnand %p6008_p6, %p7089_p9  ;;  %p6014_p12 = scmp.lt.u32.totalorder %s6012_s15, %s6007_s27 }
  0x62   : > { %p6016_p4 = scmp.lt.u32.totalorder %s6007_s27, %s6380_s12 }
  0x63   : > { %p6011_p5 = pneg %p6010_p0  ;;  %p6015_p3 = por %p6014_p12, %p6013_p1 }
  0x65   : > { %p6017_p7 = por %p6016_p4, %p6015_p3 }
  0x67   : > { %p6018_p13 = pnand %p6017_p7, %p6011_p5 }
  0x69   : > { %6021 = shalt.err (!%p6018_p13)
}
  0x6a   : > { %s6022_s8 = scalar_lea.vmem %s247_s26, 80  ;;  %p7090_p10 = pmov %p7089_p9 }
  0x6b   : > { %p6023_p8 = scmp.ne.s32.totalorder %s247_s26, %s6022_s8  ;;  %s6138_s6 = smov [#allocation7]  }
  0x6c   : > { %s6027_s10 = sshll.u32 %s6138_s6, 4  ;;  %s6028_s10 = int_to_ptr.vmem [resolvable:$false] %s6027_s10 }
  0x6d   : > { %p6025_p11 = pnand %p6023_p8, %p7090_p10  ;;  %s6029_s17 = scalar_lea.vmem %s6028_s10, 160 }
  0x6e   : > { %p6030_p9 = scmp.lt.s32.totalorder %s247_s26, %s6028_s10  ;;  %p6031_p0 = scmp.lt.s32.totalorder %s6029_s17, %s6022_s8 }
  0x6f   : > { %p6026_p6 = pneg %p6025_p11 }
  0x70   : > { %p6032_p1 = por %p6031_p0, %p6030_p9 }
  0x72   : > { %p6033_p12 = pnand %p6032_p1, %p6026_p6 }
  0x74   : > { %6036 = shalt.err (!%p6033_p12)
}
  0x75   : > { %5164 = dma.hbm_to_vmem [thread:$0]  (!%p6292_p2), %s6380_s12, 80, %s247_s26, %s6301_s29  }
  0x76   : > { %p7091_p5 = scmp.ne.s32.totalorder %s7087_s28, 0 }
  0x77   : > { %s257_s2 = sand.u32 (!%p7091_p5), 1, %s6107_s19   ;;  %p7092_p3 = scmp.ne.s32.totalorder (!%p7091_p5), %s7078_s7, 0 }
  0x78   : > { %255 = sbr.rel (%p7091_p5) target bundleno = 1040 (0x410), region = 36  ;;  %s258_s14 = scalar_lea.sflag (!%p7091_p5), [#allocation4], %s257_s2 }
  0x79   : > { %s5147_s11 = smul.u32 (!%p7091_p5), 3840, %s257_s2 }
  0x7b   : > { %s6406_s27 = scalar_lea.vmem (!%p7091_p5), [#allocation3], %s5147_s11 }
  0x7f   : > { %6082 = dma.done.wait (%p7092_p3), %s258_s14, 61440  }
  0x80   : > { %6084 = vsyncadd (%p7092_p3), %s258_s14, 4294905856  ;;  %s7093_s5 = sadd.s32 4294967295, %s6131_s25   ;;  %s268_s12 = sand.u32 1, %s6095_s16  }
  0x81   : > { %s266_s29 = sand.u32 1, %s7093_s5   ;;  %s6415_s28 = smul.u32 5, %s268_s12 }
  0x82   : > { %s267_s26 = scalar_lea.sflag [#allocation6], %s266_s29  ;;  %p7094_p2 = scmp.ne.s32.totalorder %s7081_s13, 0 }
  0x83   : > { %s270_s18 = scalar_lea.vmem [#allocation5], %s6415_s28 }
  0x84   : > { %6086 = dma.done.wait (%p7094_p2), %s267_s26, 160  }
  0x85   : > { %6088 = vsyncadd (%p7094_p2), %s267_s26, 4294967136  ;;  %s318_s7 = smul.u32 12, %s6115_s21  ;;  %p328_p4 = scmp.lt.s32.totalorder %s6119_s22, 1 }
  0x86   : > { %s279_s17 = scalar_lea.vmem [#allocation7], %s6415_s28  ;;  %p4482_p13 = scmp.ne.s32.totalorder %s6115_s21, 0 }
  0x87   : > { %p319_p7 = scmp.lt.s32.totalorder %s318_s7, 23  ;;  %s7116_s22 = smov (!%p328_p4, %s6119_s22), 1  ;;  %v6139_v0 = vmov (!%p4482_p13), 0.0  }
  0x88   : > { %s4481_s9 = sshll.u32 %s7116_s22, 2  ;;  %336 = sbr.rel (%p4482_p13) target bundleno = 143 (0x8f), region = 52  ;;  %337 = vst [vmem:[#allocation2] sm:$0xff] (!%p4482_p13), %v6139_v0  ;;  %338 = vst [vmem:[#allocation2 + $0x8] sm:$0xff] (!%p4482_p13), %v6139_v0 }
  0x89   : > { %s7118_s7 = smov (!%p319_p7, %s318_s7), 23  ;;  %s6428_s8 = scalar_lea.vmem %s7061_s4, %s4481_s9  ;;  %339 = vst [vmem:[#allocation2 + $0x10] sm:$0xf] (!%p4482_p13), %v6139_v0 }
  0x8a   : > { %s4480_s15 = sshll.u32 %s7118_s7, 1 }
  0x8b   : > { %s6433_s13 = scalar_lea.vmem %s7057_s0, %s4480_s15 }
  0x8f PF: > { %v5260_v1 = vld [vmem:[%s6406_s27 + $0x4] ss:$20 sps:$4 sm:$0xff]   ;;  %v5262_v2 = vld [vmem:[%s6406_s27 + $0xc] ss:$20 sps:$4 sm:$0xff]   ;;  %v5265_v4 = vld [vmem:[%s6406_s27 + $0x8] ss:$20 sps:$4 sm:$0xff]   ;;  %v929_v39 = vlaneseq }
  0x90   : > { %3484 = vmatprep.subr.bf16.mxu0 %v5260_v1  ;;  %v5264_v3 = vld [vmem:[%s6406_s27] ss:$20 sps:$4 sm:$0xff]   ;;  %3730 = vmatprep.subr.bf16.mxu1 %v5262_v2  ;;  %v5270_v7 = vld [vmem:[%s6406_s27 + $0x28] ss:$20 sps:$4 sm:$0xff]   ;;  %v5271_v8 = vld [vmem:[%s6406_s27 + $0x30] ss:$20 sps:$4 sm:$0xff]  }
  0x91   : > { %v5266_v5 = vld [vmem:[%s6406_s27 + $0x2c] ss:$20 sps:$4 sm:$0xff]   ;;  %3485 = vmatpush1.bf16.msra.mxu0 %v5264_v3  ;;  %3731 = vmatpush1.bf16.msra.mxu1 %v5265_v4  ;;  %v5268_v6 = vld [vmem:[%s6406_s27 + $0x34] ss:$20 sps:$4 sm:$0xff]   ;;  %v5274_v10 = vld [vmem:[%s6406_s27 + $0x5c] ss:$20 sps:$4 sm:$0xff]  }
  0x92   : > { %3486 = vmatprep.subr.bf16.mxu0 %v5266_v5  ;;  %3732 = vmatprep.subr.bf16.mxu1 %v5268_v6  ;;  %v5272_v9 = vld [vmem:[%s6406_s27 + $0x54] ss:$20 sps:$4 sm:$0xff]   ;;  %v5276_v11 = vld [vmem:[%s6406_s27 + $0x50] ss:$20 sps:$4 sm:$0xff]   ;;  %v5277_v12 = vld [vmem:[%s6406_s27 + $0x58] ss:$20 sps:$4 sm:$0xff]  }
  0x93   : > { %v5278_v13 = vld [vmem:[%s6406_s27 + $0x7c] ss:$20 sps:$4 sm:$0xff]   ;;  %v5280_v14 = vld [vmem:[%s6406_s27 + $0x84] ss:$20 sps:$4 sm:$0xff]   ;;  %v5283_v16 = vld [vmem:[%s6406_s27 + $0x80] ss:$20 sps:$4 sm:$0xff]  }
  0x94   : > { %v5282_v15 = vld [vmem:[%s6406_s27 + $0x78] ss:$20 sps:$4 sm:$0xff]   ;;  %v5288_v19 = vld [vmem:[%s6406_s27 + $0xa0] ss:$20 sps:$4 sm:$0xff]   ;;  %v5289_v20 = vld [vmem:[%s6406_s27 + $0xa8] ss:$20 sps:$4 sm:$0xff]  }
  0x95   : > { %3487 = vmatpush1.bf16.msra.mxu0 %v5270_v7  ;;  %3733 = vmatpush1.bf16.msra.mxu1 %v5271_v8  ;;  %v5284_v17 = vld [vmem:[%s6406_s27 + $0xa4] ss:$20 sps:$4 sm:$0xff]   ;;  %v5286_v18 = vld [vmem:[%s6406_s27 + $0xac] ss:$20 sps:$4 sm:$0xff]   ;;  %v5292_v22 = vld [vmem:[%s6406_s27 + $0xd4] ss:$20 sps:$4 sm:$0xff]  }
  0x96   : > { %3488 = vmatprep.subr.bf16.mxu0 %v5272_v9  ;;  %3734 = vmatprep.subr.bf16.mxu1 %v5274_v10  ;;  %v5290_v21 = vld [vmem:[%s6406_s27 + $0xcc] ss:$20 sps:$4 sm:$0xff]   ;;  %v5294_v23 = vld [vmem:[%s6406_s27 + $0xc8] ss:$20 sps:$4 sm:$0xff]   ;;  %v5295_v24 = vld [vmem:[%s6406_s27 + $0xd0] ss:$20 sps:$4 sm:$0xff]  }
  0x97   : > { %v5296_v25 = vld [vmem:[%s6406_s27 + $0xf4] ss:$20 sps:$4 sm:$0xff]   ;;  %v5298_v26 = vld [vmem:[%s6406_s27 + $0xfc] ss:$20 sps:$4 sm:$0xff]   ;;  %v5301_v28 = vld [vmem:[%s6406_s27 + $0xf8] ss:$20 sps:$4 sm:$0xff]  }
  0x98   : > { %v5300_v27 = vld [vmem:[%s6406_s27 + $0xf0] ss:$20 sps:$4 sm:$0xff]   ;;  %v5306_v31 = vld [vmem:[%s6406_s27 + $0x118] ss:$20 sps:$4 sm:$0xff]   ;;  %v5307_v32 = vld [vmem:[%s6406_s27 + $0x120] ss:$20 sps:$4 sm:$0xff]  }
  0x99   : > { %3489 = vmatpush1.bf16.msra.mxu0 %v5276_v11  ;;  %3735 = vmatpush1.bf16.msra.mxu1 %v5277_v12  ;;  %v5302_v29 = vld [vmem:[%s6406_s27 + $0x11c] ss:$20 sps:$4 sm:$0xff]   ;;  %v5304_v30 = vld [vmem:[%s6406_s27 + $0x124] ss:$20 sps:$4 sm:$0xff]   ;;  %v5310_v34 = vld [vmem:[%s6406_s27 + $0x14c] ss:$20 sps:$4 sm:$0xff]  }
  0x9a   : > { %3490 = vmatprep.subr.bf16.mxu0 %v5278_v13  ;;  %3736 = vmatprep.subr.bf16.mxu1 %v5280_v14  ;;  %v5308_v33 = vld [vmem:[%s6406_s27 + $0x144] ss:$20 sps:$4 sm:$0xff]   ;;  %v5312_v35 = vld [vmem:[%s6406_s27 + $0x140] ss:$20 sps:$4 sm:$0xff]   ;;  %v5313_v36 = vld [vmem:[%s6406_s27 + $0x148] ss:$20 sps:$4 sm:$0xff]  }
  0x9b   : > { %v6140_v37 = vmov 1983009808   ;;  %v5314_v40 = vld [vmem:[%s6406_s27 + $0x16c] ss:$20 sps:$4 sm:$0xff]   ;;  %v5316_v41 = vld [vmem:[%s6406_s27 + $0x174] ss:$20 sps:$4 sm:$0xff]  }
  0x9c   : > { %v927_v38 = vunpack.c.l.s4 %v6140_v37  ;;  %v5318_v42 = vld [vmem:[%s6406_s27 + $0x168] ss:$20 sps:$4 sm:$0xff]   ;;  %v6476_v44 = vshrl.u32 %v929_v39, 7  ;;  %v5319_v45 = vld [vmem:[%s6406_s27 + $0x170] ss:$20 sps:$4 sm:$0xff]   ;;  %p4963_p8 = scmp.ne.s32.totalorder %s6115_s21, 1 }
  0x9d   : > { %3491 = vmatpush1.bf16.msra.mxu0 %v5282_v15  ;;  %3737 = vmatpush1.bf16.msra.mxu1 %v5283_v16  ;;  %v5320_v46 = vld [vmem:[%s6406_s27 + $0x194] ss:$20 sps:$4 sm:$0xff]   ;;  %v5322_v47 = vld [vmem:[%s6406_s27 + $0x19c] ss:$20 sps:$4 sm:$0xff]   ;;  %v5325_v49 = vld [vmem:[%s6406_s27 + $0x198] ss:$20 sps:$4 sm:$0xff]  }
  0x9e   : > { %3492 = vmatprep.subr.bf16.mxu0 %v5284_v17  ;;  %3738 = vmatprep.subr.bf16.mxu1 %v5286_v18  ;;  %v928_v43 = vunpack.c.0.s8 %v927_v38  ;;  %v5324_v48 = vld [vmem:[%s6406_s27 + $0x190] ss:$20 sps:$4 sm:$0xff]   ;;  %v5330_v54 = vld [vmem:[%s6406_s27 + $0x1b8] ss:$20 sps:$4 sm:$0xff]   ;;  %v5331_v56 = vld [vmem:[%s6406_s27 + $0x1c0] ss:$20 sps:$4 sm:$0xff]  }
  0x9f   : > { %v5326_v51 = vld [vmem:[%s6406_s27 + $0x1bc] ss:$20 sps:$4 sm:$0xff]   ;;  %v5328_v52 = vld [vmem:[%s6406_s27 + $0x1c4] ss:$20 sps:$4 sm:$0xff]   ;;  %v5334_v58 = vld [vmem:[%s6406_s27 + $0x1ec] ss:$20 sps:$4 sm:$0xff]  }
  0xa0   : > { %v6484_v50 = vsub.s32 %v928_v43, %v6476_v44  ;;  %v343_v53 = vld [vmem:[%s6433_s13] sm:$0xff]  ;;  %v5332_v57 = vld [vmem:[%s6406_s27 + $0x1e4] ss:$20 sps:$4 sm:$0xff]   ;;  %v5336_v60 = vld [vmem:[%s6406_s27 + $0x1e0] ss:$20 sps:$4 sm:$0xff]   ;;  %vm4324_vm0 = vcmask (!%p4963_p8), 1043456  }
  0xa1   : > { %3493 = vmatpush1.bf16.msra.mxu0 %v5288_v19  ;;  %3739 = vmatpush1.bf16.msra.mxu1 %v5289_v20  ;;  %v5337_v61 = vld [vmem:[%s6406_s27 + $0x1e8] ss:$20 sps:$4 sm:$0xff]   ;;  %v5338_v62 = vld [vmem:[%s6406_s27 + $0x20c] ss:$20 sps:$4 sm:$0xff]   ;;  %v5343_v1 = vld [vmem:[%s6406_s27 + $0x210] ss:$20 sps:$4 sm:$0xff]   ;;  %v925_v8 = vcombine.high %v343_v53, %v343_v53 }
  0xa2   : > { %3494 = vmatprep.subr.bf16.mxu0 %v5290_v21  ;;  %3740 = vmatprep.subr.bf16.mxu1 %v5292_v22  ;;  %v6491_v55 = vrot.slane %v343_v53, %v6484_v50  ;;  %v5340_v63 = vld [vmem:[%s6406_s27 + $0x214] ss:$20 sps:$4 sm:$0xff]   ;;  %v5346_v3 = vld [vmem:[%s6406_s27 + $0x23c] ss:$20 sps:$4 sm:$0xff]   ;;  %v5349_v5 = vld [vmem:[%s6406_s27 + $0x238] ss:$20 sps:$4 sm:$0xff]  }
  0xa3   : > { %v5342_v0 = vld [vmem:[%s6406_s27 + $0x208] ss:$20 sps:$4 sm:$0xff]   ;;  %v5348_v4 = vld [vmem:[%s6406_s27 + $0x230] ss:$20 sps:$4 sm:$0xff]   ;;  %v5354_v9 = vld [vmem:[%s6406_s27 + $0x258] ss:$20 sps:$4 sm:$0xff]   ;;  %v6519_v13 = vrot.slane %v925_v8, %v6484_v50 }
  0xa4   : > { %v6498_v59 = vcombine.high %v6491_v55, %v6491_v55  ;;  %v5344_v2 = vld [vmem:[%s6406_s27 + $0x234] ss:$20 sps:$4 sm:$0xff]   ;;  %v5350_v6 = vld [vmem:[%s6406_s27 + $0x25c] ss:$20 sps:$4 sm:$0xff]   ;;  %v5352_v7 = vld [vmem:[%s6406_s27 + $0x264] ss:$20 sps:$4 sm:$0xff]  }
  0xa5   : > { %3495 = vmatpush1.bf16.msra.mxu0 %v5294_v23  ;;  %3741 = vmatpush1.bf16.msra.mxu1 %v5295_v24  ;;  %v5355_v10 = vld [vmem:[%s6406_s27 + $0x260] ss:$20 sps:$4 sm:$0xff]   ;;  %v5358_v11 = vld [vmem:[%s6406_s27 + $0x284] ss:$20 sps:$4 sm:$0xff]   ;;  %v5359_v15 = vld [vmem:[%s6406_s27 + $0x288] ss:$20 sps:$4 sm:$0xff]   ;;  %v6527_v18 = vcombine.high %v6519_v13, %v6519_v13 }
  0xa6   : > { %3496 = vmatprep.subr.bf16.mxu0 %v5296_v25  ;;  %3742 = vmatprep.subr.bf16.mxu1 %v5298_v26  ;;  %v5361_v12 = vld [vmem:[%s6406_s27 + $0x28c] ss:$20 sps:$4 sm:$0xff]   ;;  %v5367_v17 = vld [vmem:[%s6406_s27 + $0x2b4] ss:$20 sps:$4 sm:$0xff]   ;;  %v5365_v20 = vld [vmem:[%s6406_s27 + $0x2b0] ss:$20 sps:$4 sm:$0xff]  }
  0xa7   : > { %3516 = vmatprep.mubr.bf16.mxu0 %v6498_v59  ;;  %3762 = vmatprep.mubr.bf16.mxu1 %v6498_v59  ;;  %v5356_v14 = vld [vmem:[%s6406_s27 + $0x280] ss:$20 sps:$4 sm:$0xff]   ;;  %v5362_v19 = vld [vmem:[%s6406_s27 + $0x2a8] ss:$20 sps:$4 sm:$0xff]   ;;  %v5368_v23 = vld [vmem:[%s6406_s27 + $0x2d0] ss:$20 sps:$4 sm:$0xff]  }
  0xa8   : > { %v5364_v16 = vld [vmem:[%s6406_s27 + $0x2ac] ss:$20 sps:$4 sm:$0xff]   ;;  %v5370_v21 = vld [vmem:[%s6406_s27 + $0x2d4] ss:$20 sps:$4 sm:$0xff]   ;;  %v5373_v22 = vld [vmem:[%s6406_s27 + $0x2dc] ss:$20 sps:$4 sm:$0xff]  }
  0xa9   : > { %3497 = vmatpush1.bf16.msra.mxu0 %v5300_v27  ;;  %3743 = vmatpush1.bf16.msra.mxu1 %v5301_v28  ;;  %v5371_v24 = vld [vmem:[%s6406_s27 + $0x2d8] ss:$20 sps:$4 sm:$0xff]   ;;  %v5376_v25 = vld [vmem:[%s6406_s27 + $0x2fc] ss:$20 sps:$4 sm:$0xff]   ;;  %v5377_v28 = vld [vmem:[%s6406_s27 + $0x300] ss:$20 sps:$4 sm:$0xff]  }
  0xaa   : > { %3498 = vmatprep.subr.bf16.mxu0 %v5302_v29  ;;  %3744 = vmatprep.subr.bf16.mxu1 %v5304_v30  ;;  %v5379_v26 = vld [vmem:[%s6406_s27 + $0x304] ss:$20 sps:$4 sm:$0xff]   ;;  %v5385_v30 = vld [vmem:[%s6406_s27 + $0x32c] ss:$20 sps:$4 sm:$0xff]   ;;  %v5394_v37 = vld [vmem:[%s6406_s27 + $0x374] ss:$20 sps:$4 sm:$0xff]  }
  0xab   : > { %v5374_v27 = vld [vmem:[%s6406_s27 + $0x2f8] ss:$20 sps:$4 sm:$0xff]   ;;  %v5397_v38 = vld [vmem:[%s6406_s27 + $0x37c] ss:$20 sps:$4 sm:$0xff]   ;;  %vm4336_vm1 = vcmask (!%p4963_p8), 3072  }
  0xac   : > { %v5382_v29 = vld [vmem:[%s6406_s27 + $0x324] ss:$20 sps:$4 sm:$0xff]   ;;  %v5410_v53 = vld [vmem:[%s6406_s27 + $0x3e8] ss:$20 sps:$4 sm:$0xff]  }
  0xad   : > { %3499 = vmatpush1.bf16.msra.mxu0 %v5306_v31  ;;  %3745 = vmatpush1.bf16.msra.mxu1 %v5307_v32  ;;  %v5380_v31 = vld [vmem:[%s6406_s27 + $0x320] ss:$20 sps:$4 sm:$0xff]   ;;  %v5383_v32 = vld [vmem:[%s6406_s27 + $0x328] ss:$20 sps:$4 sm:$0xff]   ;;  %v5392_v39 = vld [vmem:[%s6406_s27 + $0x370] ss:$20 sps:$4 sm:$0xff]  }
  0xae   : > { %3500 = vmatprep.subr.bf16.mxu0 %v5308_v33  ;;  %3746 = vmatprep.subr.bf16.mxu1 %v5310_v34  ;;  %v5388_v33 = vld [vmem:[%s6406_s27 + $0x34c] ss:$20 sps:$4 sm:$0xff]   ;;  %v5391_v34 = vld [vmem:[%s6406_s27 + $0x354] ss:$20 sps:$4 sm:$0xff]   ;;  %v5437_v8 = vld [vmem:[%s6406_s27 + $0x490] ss:$20 sps:$4 sm:$0xff]  }
  0xaf   : > { %v5398_v43 = vld [vmem:[%s6406_s27 + $0x398] ss:$20 sps:$4 sm:$0xff]  }
  0xb1   : > { %3501 = vmatpush1.bf16.msra.mxu0 %v5312_v35  ;;  %3747 = vmatpush1.bf16.msra.mxu1 %v5313_v36  ;;  %v5386_v35 = vld [vmem:[%s6406_s27 + $0x348] ss:$20 sps:$4 sm:$0xff]   ;;  %v5389_v36 = vld [vmem:[%s6406_s27 + $0x350] ss:$20 sps:$4 sm:$0xff]  }
  0xb2   : > { %3502 = vmatprep.subr.bf16.mxu0 %v5314_v40  ;;  %3748 = vmatprep.subr.bf16.mxu1 %v5316_v41  ;;  %v5395_v40 = vld [vmem:[%s6406_s27 + $0x378] ss:$20 sps:$4 sm:$0xff]   ;;  %v5400_v41 = vld [vmem:[%s6406_s27 + $0x39c] ss:$20 sps:$4 sm:$0xff]  }
  0xb5   : > { %3503 = vmatpush1.bf16.msra.mxu0 %v5318_v42  ;;  %3749 = vmatpush1.bf16.msra.mxu1 %v5319_v45  ;;  %v5403_v42 = vld [vmem:[%s6406_s27 + $0x3a4] ss:$20 sps:$4 sm:$0xff]   ;;  %v5401_v45 = vld [vmem:[%s6406_s27 + $0x3a0] ss:$20 sps:$4 sm:$0xff]  }
  0xb6   : > { %3504 = vmatprep.subr.bf16.mxu0 %v5320_v46  ;;  %3750 = vmatprep.subr.bf16.mxu1 %v5322_v47  ;;  %v5406_v46 = vld [vmem:[%s6406_s27 + $0x3c4] ss:$20 sps:$4 sm:$0xff]   ;;  %v5409_v47 = vld [vmem:[%s6406_s27 + $0x3cc] ss:$20 sps:$4 sm:$0xff]  }
  0xb9   : > { %3505 = vmatpush1.bf16.msra.mxu0 %v5324_v48  ;;  %3751 = vmatpush1.bf16.msra.mxu1 %v5325_v49  ;;  %v5404_v48 = vld [vmem:[%s6406_s27 + $0x3c0] ss:$20 sps:$4 sm:$0xff]   ;;  %v5407_v49 = vld [vmem:[%s6406_s27 + $0x3c8] ss:$20 sps:$4 sm:$0xff]  }
  0xba   : > { %3506 = vmatprep.subr.bf16.mxu0 %v5326_v51  ;;  %3752 = vmatprep.subr.bf16.mxu1 %v5328_v52  ;;  %v5412_v51 = vld [vmem:[%s6406_s27 + $0x3ec] ss:$20 sps:$4 sm:$0xff]   ;;  %v5415_v52 = vld [vmem:[%s6406_s27 + $0x3f4] ss:$20 sps:$4 sm:$0xff]  }
  0xbd   : > { %3507 = vmatpush1.bf16.msra.mxu0 %v5330_v54  ;;  %3753 = vmatpush1.bf16.msra.mxu1 %v5331_v56  ;;  %v5413_v54 = vld [vmem:[%s6406_s27 + $0x3f0] ss:$20 sps:$4 sm:$0xff]   ;;  %v5418_v56 = vld [vmem:[%s6406_s27 + $0x414] ss:$20 sps:$4 sm:$0xff]  }
  0xbe   : > { %3508 = vmatprep.subr.bf16.mxu0 %v5332_v57  ;;  %3754 = vmatprep.subr.bf16.mxu1 %v5334_v58  ;;  %v5421_v57 = vld [vmem:[%s6406_s27 + $0x41c] ss:$20 sps:$4 sm:$0xff]  }
  0xbf   : > { %v5416_v58 = vld [vmem:[%s6406_s27 + $0x410] ss:$20 sps:$4 sm:$0xff]  }
  0xc1   : > { %3509 = vmatpush1.bf16.msra.mxu0 %v5336_v60  ;;  %3755 = vmatpush1.bf16.msra.mxu1 %v5337_v61  ;;  %v5419_v60 = vld [vmem:[%s6406_s27 + $0x418] ss:$20 sps:$4 sm:$0xff]   ;;  %v5424_v61 = vld [vmem:[%s6406_s27 + $0x43c] ss:$20 sps:$4 sm:$0xff]  }
  0xc2   : > { %3510 = vmatprep.subr.bf16.mxu0 %v5338_v62  ;;  %3756 = vmatprep.subr.bf16.mxu1 %v5340_v63  ;;  %v5427_v62 = vld [vmem:[%s6406_s27 + $0x444] ss:$20 sps:$4 sm:$0xff]  }
  0xc3   : > { %v5422_v63 = vld [vmem:[%s6406_s27 + $0x438] ss:$20 sps:$4 sm:$0xff]  }
  0xc5   : > { %3511 = vmatpush1.bf16.msra.mxu0 %v5342_v0  ;;  %3757 = vmatpush1.bf16.msra.mxu1 %v5343_v1  ;;  %v5425_v0 = vld [vmem:[%s6406_s27 + $0x440] ss:$20 sps:$4 sm:$0xff]   ;;  %v5430_v1 = vld [vmem:[%s6406_s27 + $0x464] ss:$20 sps:$4 sm:$0xff]  }
  0xc6   : > { %3512 = vmatprep.subr.bf16.mxu0 %v5344_v2  ;;  %3758 = vmatprep.subr.bf16.mxu1 %v5346_v3  ;;  %v5433_v2 = vld [vmem:[%s6406_s27 + $0x46c] ss:$20 sps:$4 sm:$0xff]  }
  0xc7   : > { %v5428_v3 = vld [vmem:[%s6406_s27 + $0x460] ss:$20 sps:$4 sm:$0xff]  }
  0xc9   : > { %3513 = vmatpush1.bf16.msra.mxu0 %v5348_v4  ;;  %3759 = vmatpush1.bf16.msra.mxu1 %v5349_v5  ;;  %v5431_v4 = vld [vmem:[%s6406_s27 + $0x468] ss:$20 sps:$4 sm:$0xff]   ;;  %v5436_v5 = vld [vmem:[%s6406_s27 + $0x48c] ss:$20 sps:$4 sm:$0xff]  }
  0xca   : > { %3514 = vmatprep.subr.bf16.mxu0 %v5350_v6  ;;  %3760 = vmatprep.subr.bf16.mxu1 %v5352_v7  ;;  %v5439_v6 = vld [vmem:[%s6406_s27 + $0x494] ss:$20 sps:$4 sm:$0xff]  }
  0xcb   : > { %v5434_v7 = vld [vmem:[%s6406_s27 + $0x488] ss:$20 sps:$4 sm:$0xff]  }
  0xcd   : > { %3515 = vmatpush1.bf16.msra.mxu0 %v5354_v9  ;;  %3761 = vmatpush1.bf16.msra.mxu1 %v5355_v10  ;;  %v5442_v9 = vld [vmem:[%s6406_s27 + $0x4b4] ss:$20 sps:$4 sm:$0xff]   ;;  %v5445_v10 = vld [vmem:[%s6406_s27 + $0x4bc] ss:$20 sps:$4 sm:$0xff]  }
  0xce   : > { %3525 = vmatprep.subr.bf16.mxu0 %v5358_v11  ;;  %3771 = vmatprep.subr.bf16.mxu1 %v5361_v12  ;;  %v5440_v11 = vld [vmem:[%s6406_s27 + $0x4b0] ss:$20 sps:$4 sm:$0xff]   ;;  %v5443_v12 = vld [vmem:[%s6406_s27 + $0x4b8] ss:$20 sps:$4 sm:$0xff]  }
  0xd0   : > { %3517 = vmatmul.mubr.bf16.vlgmr.msra.gmra.mrb[0].mxu0 %v6491_v55  ;;  %3763 = vmatmul.mubr.bf16.vlgmr.msra.gmra.mrb[0].mxu1 %v6491_v55 }
  0xd1   : > { %3526 = vmatpush1.bf16.msra.mxu0 %v5356_v14  ;;  %3772 = vmatpush1.bf16.msra.mxu1 %v5359_v15  ;;  %v5448_v14 = vld [vmem:[%s6406_s27 + $0x4dc] ss:$20 sps:$4 sm:$0xff]   ;;  %v5451_v15 = vld [vmem:[%s6406_s27 + $0x4e4] ss:$20 sps:$4 sm:$0xff]  }
  0xd2   : > { %3527 = vmatprep.subr.bf16.mxu0 %v5364_v16  ;;  %3773 = vmatprep.subr.bf16.mxu1 %v5367_v17  ;;  %v5446_v16 = vld [vmem:[%s6406_s27 + $0x4d8] ss:$20 sps:$4 sm:$0xff]   ;;  %v5449_v17 = vld [vmem:[%s6406_s27 + $0x4e0] ss:$20 sps:$4 sm:$0xff]  }
  0xd3   : > { %3557 = vmatprep.mubr.bf16.mxu0 %v6527_v18  ;;  %3803 = vmatprep.mubr.bf16.mxu1 %v6527_v18 }
  0xd5   : > { %3528 = vmatpush1.bf16.msra.mxu0 %v5362_v19  ;;  %3774 = vmatpush1.bf16.msra.mxu1 %v5365_v20  ;;  %v5455_v19 = vld [vmem:[%s6406_s27 + $0x504] ss:$20 sps:$4 sm:$0xff]   ;;  %v5458_v20 = vld [vmem:[%s6406_s27 + $0x50c] ss:$20 sps:$4 sm:$0xff]  }
  0xd6   : > { %3529 = vmatprep.subr.bf16.mxu0 %v5370_v21  ;;  %3775 = vmatprep.subr.bf16.mxu1 %v5373_v22  ;;  %v5453_v21 = vld [vmem:[%s6406_s27 + $0x500] ss:$20 sps:$4 sm:$0xff]   ;;  %v5456_v22 = vld [vmem:[%s6406_s27 + $0x508] ss:$20 sps:$4 sm:$0xff]  }
  0xd9   : > { %3530 = vmatpush1.bf16.msra.mxu0 %v5368_v23  ;;  %3776 = vmatpush1.bf16.msra.mxu1 %v5371_v24  ;;  %v6596_v23 = vld [vmem:[%s6433_s13 + $0x8] sm:$0xff]  ;;  %v5461_v24 = vld [vmem:[%s6406_s27 + $0x52c] ss:$20 sps:$4 sm:$0xff]  }
  0xda   : > { %3531 = vmatprep.subr.bf16.mxu0 %v5376_v25  ;;  %3777 = vmatprep.subr.bf16.mxu1 %v5379_v26  ;;  %v5464_v25 = vld [vmem:[%s6406_s27 + $0x534] ss:$20 sps:$4 sm:$0xff]   ;;  %v6602_v26 = vrot.slane %v6596_v23, %v6484_v50 }
  0xdd   : > { %3532 = vmatpush1.bf16.msra.mxu0 %v5374_v27  ;;  %3778 = vmatpush1.bf16.msra.mxu1 %v5377_v28  ;;  %v6608_v27 = vcombine.high %v6602_v26, %v6602_v26  ;;  %v5459_v28 = vld [vmem:[%s6406_s27 + $0x528] ss:$20 sps:$4 sm:$0xff]  }
  0xde   : > { %3533 = vmatprep.subr.bf16.mxu0 %v5382_v29  ;;  %3779 = vmatprep.subr.bf16.mxu1 %v5385_v30  ;;  %v5462_v29 = vld [vmem:[%s6406_s27 + $0x530] ss:$20 sps:$4 sm:$0xff]   ;;  %v5467_v30 = vld [vmem:[%s6406_s27 + $0x554] ss:$20 sps:$4 sm:$0xff]  }
  0xe1   : > { %3534 = vmatpush1.bf16.msra.mxu0 %v5380_v31  ;;  %3780 = vmatpush1.bf16.msra.mxu1 %v5383_v32  ;;  %v5470_v31 = vld [vmem:[%s6406_s27 + $0x55c] ss:$20 sps:$4 sm:$0xff]  }
  0xe2   : > { %3535 = vmatprep.subr.bf16.mxu0 %v5388_v33  ;;  %3781 = vmatprep.subr.bf16.mxu1 %v5391_v34  ;;  %v5465_v32 = vld [vmem:[%s6406_s27 + $0x550] ss:$20 sps:$4 sm:$0xff]   ;;  %v5468_v33 = vld [vmem:[%s6406_s27 + $0x558] ss:$20 sps:$4 sm:$0xff]  }
  0xe3   : > { %v5473_v34 = vld [vmem:[%s6406_s27 + $0x57c] ss:$20 sps:$4 sm:$0xff]  }
  0xe5   : > { %3536 = vmatpush1.bf16.msra.mxu0 %v5386_v35  ;;  %3782 = vmatpush1.bf16.msra.mxu1 %v5389_v36  ;;  %v5476_v35 = vld [vmem:[%s6406_s27 + $0x584] ss:$20 sps:$4 sm:$0xff]  }
  0xe6   : > { %3537 = vmatprep.subr.bf16.mxu0 %v5394_v37  ;;  %3783 = vmatprep.subr.bf16.mxu1 %v5397_v38  ;;  %v5471_v36 = vld [vmem:[%s6406_s27 + $0x578] ss:$20 sps:$4 sm:$0xff]   ;;  %v5474_v37 = vld [vmem:[%s6406_s27 + $0x580] ss:$20 sps:$4 sm:$0xff]  }
  0xe7   : > { %v5479_v38 = vld [vmem:[%s6406_s27 + $0x5a4] ss:$20 sps:$4 sm:$0xff]  }
  0xe9   : > { %3538 = vmatpush1.bf16.msra.mxu0 %v5392_v39  ;;  %3784 = vmatpush1.bf16.msra.mxu1 %v5395_v40  ;;  %v5482_v39 = vld [vmem:[%s6406_s27 + $0x5ac] ss:$20 sps:$4 sm:$0xff]  }
  0xea   : > { %3539 = vmatprep.subr.bf16.mxu0 %v5400_v41  ;;  %3785 = vmatprep.subr.bf16.mxu1 %v5403_v42  ;;  %v5477_v40 = vld [vmem:[%s6406_s27 + $0x5a0] ss:$20 sps:$4 sm:$0xff]   ;;  %v5480_v41 = vld [vmem:[%s6406_s27 + $0x5a8] ss:$20 sps:$4 sm:$0xff]  }
  0xeb   : > { %v5485_v42 = vld [vmem:[%s6406_s27 + $0x5cc] ss:$20 sps:$4 sm:$0xff]  }
  0xed   : > { %3540 = vmatpush1.bf16.msra.mxu0 %v5398_v43  ;;  %3786 = vmatpush1.bf16.msra.mxu1 %v5401_v45  ;;  %v5488_v43 = vld [vmem:[%s6406_s27 + $0x5d4] ss:$20 sps:$4 sm:$0xff]  }
  0xee   : > { %3541 = vmatprep.subr.bf16.mxu0 %v5406_v46  ;;  %3787 = vmatprep.subr.bf16.mxu1 %v5409_v47  ;;  %v5483_v45 = vld [vmem:[%s6406_s27 + $0x5c8] ss:$20 sps:$4 sm:$0xff]   ;;  %v5486_v46 = vld [vmem:[%s6406_s27 + $0x5d0] ss:$20 sps:$4 sm:$0xff]  }
  0xef   : > { %v5491_v47 = vld [vmem:[%s6406_s27 + $0x5f4] ss:$20 sps:$4 sm:$0xff]  }
  0xf1   : > { %3542 = vmatpush1.bf16.msra.mxu0 %v5404_v48  ;;  %3788 = vmatpush1.bf16.msra.mxu1 %v5407_v49  ;;  %v5494_v48 = vld [vmem:[%s6406_s27 + $0x5fc] ss:$20 sps:$4 sm:$0xff]  }
  0xf2   : > { %3543 = vmatprep.subr.bf16.mxu0 %v5412_v51  ;;  %3789 = vmatprep.subr.bf16.mxu1 %v5415_v52  ;;  %v5489_v49 = vld [vmem:[%s6406_s27 + $0x5f0] ss:$20 sps:$4 sm:$0xff]   ;;  %v5492_v51 = vld [vmem:[%s6406_s27 + $0x5f8] ss:$20 sps:$4 sm:$0xff]  }
  0xf3   : > { %v5497_v52 = vld [vmem:[%s6406_s27 + $0x61c] ss:$20 sps:$4 sm:$0xff]  }
  0xf5   : > { %3544 = vmatpush1.bf16.msra.mxu0 %v5410_v53  ;;  %3790 = vmatpush1.bf16.msra.mxu1 %v5413_v54  ;;  %v5500_v53 = vld [vmem:[%s6406_s27 + $0x624] ss:$20 sps:$4 sm:$0xff]  }
  0xf6   : > { %3545 = vmatprep.subr.bf16.mxu0 %v5418_v56  ;;  %3791 = vmatprep.subr.bf16.mxu1 %v5421_v57  ;;  %v5495_v54 = vld [vmem:[%s6406_s27 + $0x618] ss:$20 sps:$4 sm:$0xff]   ;;  %v5498_v56 = vld [vmem:[%s6406_s27 + $0x620] ss:$20 sps:$4 sm:$0xff]  }
  0xf7   : > { %v5503_v57 = vld [vmem:[%s6406_s27 + $0x644] ss:$20 sps:$4 sm:$0xff]  }
  0xf9   : > { %3546 = vmatpush1.bf16.msra.mxu0 %v5416_v58  ;;  %3792 = vmatpush1.bf16.msra.mxu1 %v5419_v60  ;;  %v5506_v58 = vld [vmem:[%s6406_s27 + $0x64c] ss:$20 sps:$4 sm:$0xff]  }
  0xfa   : > { %3547 = vmatprep.subr.bf16.mxu0 %v5424_v61  ;;  %3793 = vmatprep.subr.bf16.mxu1 %v5427_v62  ;;  %v5501_v60 = vld [vmem:[%s6406_s27 + $0x640] ss:$20 sps:$4 sm:$0xff]   ;;  %v5504_v61 = vld [vmem:[%s6406_s27 + $0x648] ss:$20 sps:$4 sm:$0xff]  }
  0xfb   : > { %v5509_v62 = vld [vmem:[%s6406_s27 + $0x66c] ss:$20 sps:$4 sm:$0xff]  }
  0xfd   : > { %3548 = vmatpush1.bf16.msra.mxu0 %v5422_v63  ;;  %3794 = vmatpush1.bf16.msra.mxu1 %v5425_v0  ;;  %v5512_v63 = vld [vmem:[%s6406_s27 + $0x674] ss:$20 sps:$4 sm:$0xff]  }
  0xfe   : > { %3549 = vmatprep.subr.bf16.mxu0 %v5430_v1  ;;  %3795 = vmatprep.subr.bf16.mxu1 %v5433_v2  ;;  %v5507_v0 = vld [vmem:[%s6406_s27 + $0x668] ss:$20 sps:$4 sm:$0xff]   ;;  %v5510_v1 = vld [vmem:[%s6406_s27 + $0x670] ss:$20 sps:$4 sm:$0xff]  }
  0xff   : > { %v5515_v2 = vld [vmem:[%s6406_s27 + $0x694] ss:$20 sps:$4 sm:$0xff]  }
 0x101   : > { %3550 = vmatpush1.bf16.msra.mxu0 %v5428_v3  ;;  %3796 = vmatpush1.bf16.msra.mxu1 %v5431_v4  ;;  %v5518_v3 = vld [vmem:[%s6406_s27 + $0x69c] ss:$20 sps:$4 sm:$0xff]  }
 0x102   : > { %3551 = vmatprep.subr.bf16.mxu0 %v5436_v5  ;;  %3797 = vmatprep.subr.bf16.mxu1 %v5439_v6  ;;  %v5513_v4 = vld [vmem:[%s6406_s27 + $0x690] ss:$20 sps:$4 sm:$0xff]   ;;  %v5516_v5 = vld [vmem:[%s6406_s27 + $0x698] ss:$20 sps:$4 sm:$0xff]  }
 0x103   : > { %v5521_v6 = vld [vmem:[%s6406_s27 + $0x6bc] ss:$20 sps:$4 sm:$0xff]  }
 0x105   : > { %3552 = vmatpush1.bf16.msra.mxu0 %v5434_v7  ;;  %3798 = vmatpush1.bf16.msra.mxu1 %v5437_v8  ;;  %v5524_v7 = vld [vmem:[%s6406_s27 + $0x6c4] ss:$20 sps:$4 sm:$0xff]  }
 0x106   : > { %3553 = vmatprep.subr.bf16.mxu0 %v5442_v9  ;;  %3799 = vmatprep.subr.bf16.mxu1 %v5445_v10  ;;  %v5519_v8 = vld [vmem:[%s6406_s27 + $0x6b8] ss:$20 sps:$4 sm:$0xff]   ;;  %v5522_v9 = vld [vmem:[%s6406_s27 + $0x6c0] ss:$20 sps:$4 sm:$0xff]  }
 0x107   : > { %v5527_v10 = vld [vmem:[%s6406_s27 + $0x6e4] ss:$20 sps:$4 sm:$0xff]  }
 0x109   : > { %3554 = vmatpush1.bf16.msra.mxu0 %v5440_v11  ;;  %3800 = vmatpush1.bf16.msra.mxu1 %v5443_v12  ;;  %v5530_v11 = vld [vmem:[%s6406_s27 + $0x6ec] ss:$20 sps:$4 sm:$0xff]  }
 0x10a   : > { %3555 = vmatprep.subr.bf16.mxu0 %v5448_v14  ;;  %3801 = vmatprep.subr.bf16.mxu1 %v5451_v15  ;;  %v5525_v12 = vld [vmem:[%s6406_s27 + $0x6e0] ss:$20 sps:$4 sm:$0xff]   ;;  %v5528_v14 = vld [vmem:[%s6406_s27 + $0x6e8] ss:$20 sps:$4 sm:$0xff]  }
 0x10b   : > { %v5533_v15 = vld [vmem:[%s6406_s27 + $0x70c] ss:$20 sps:$4 sm:$0xff]  }
 0x10d   : > { %3556 = vmatpush1.bf16.msra.mxu0 %v5446_v16  ;;  %3802 = vmatpush1.bf16.msra.mxu1 %v5449_v17  ;;  %v5536_v16 = vld [vmem:[%s6406_s27 + $0x714] ss:$20 sps:$4 sm:$0xff]  }
 0x10e   : > { %3566 = vmatprep.subr.bf16.mxu0 %v5455_v19  ;;  %3812 = vmatprep.subr.bf16.mxu1 %v5458_v20  ;;  %v5531_v17 = vld [vmem:[%s6406_s27 + $0x708] ss:$20 sps:$4 sm:$0xff]   ;;  %v5534_v19 = vld [vmem:[%s6406_s27 + $0x710] ss:$20 sps:$4 sm:$0xff]  }
 0x10f   : > { %v5539_v20 = vld [vmem:[%s6406_s27 + $0x734] ss:$20 sps:$4 sm:$0xff]  }
 0x110   : > { %3558 = vmatmul.mubr.bf16.vlgmr.msra.gmra.mrb[0].mxu0 %v6519_v13  ;;  %3804 = vmatmul.mubr.bf16.vlgmr.msra.gmra.mrb[0].mxu1 %v6519_v13 }
 0x111   : > { %3567 = vmatpush1.bf16.msra.mxu0 %v5453_v21  ;;  %3813 = vmatpush1.bf16.msra.mxu1 %v5456_v22  ;;  %v5542_v21 = vld [vmem:[%s6406_s27 + $0x73c] ss:$20 sps:$4 sm:$0xff]  }
 0x112   : > { %3568 = vmatprep.subr.bf16.mxu0 %v5461_v24  ;;  %3814 = vmatprep.subr.bf16.mxu1 %v5464_v25  ;;  %v5537_v22 = vld [vmem:[%s6406_s27 + $0x730] ss:$20 sps:$4 sm:$0xff]   ;;  %v5540_v24 = vld [vmem:[%s6406_s27 + $0x738] ss:$20 sps:$4 sm:$0xff]  }
 0x113   : > { %3598 = vmatprep.mubr.bf16.mxu0 %v6608_v27  ;;  %3844 = vmatprep.mubr.bf16.mxu1 %v6608_v27  ;;  %v5545_v25 = vld [vmem:[%s6406_s27 + $0x75c] ss:$20 sps:$4 sm:$0xff]  }
 0x115   : > { %3569 = vmatpush1.bf16.msra.mxu0 %v5459_v28  ;;  %3815 = vmatpush1.bf16.msra.mxu1 %v5462_v29  ;;  %v5548_v28 = vld [vmem:[%s6406_s27 + $0x764] ss:$20 sps:$4 sm:$0xff]   ;;  %v942_v29 = vcombine.high %v6596_v23, %v6596_v23  ;;  %v5552_v23 = vld [vmem:[%s6406_s27 + $0x788] ss:$20 sps:$4 sm:$0xff]  }
 0x116   : > { %3570 = vmatprep.subr.bf16.mxu0 %v5467_v30  ;;  %3816 = vmatprep.subr.bf16.mxu1 %v5470_v31  ;;  %v5543_v30 = vld [vmem:[%s6406_s27 + $0x758] ss:$20 sps:$4 sm:$0xff]   ;;  %v5546_v31 = vld [vmem:[%s6406_s27 + $0x760] ss:$20 sps:$4 sm:$0xff]  }
 0x119   : > { %3571 = vmatpush1.bf16.msra.mxu0 %v5465_v32  ;;  %3817 = vmatpush1.bf16.msra.mxu1 %v5468_v33  ;;  %v5551_v32 = vld [vmem:[%s6406_s27 + $0x784] ss:$20 sps:$4 sm:$0xff]   ;;  %v5554_v33 = vld [vmem:[%s6406_s27 + $0x78c] ss:$20 sps:$4 sm:$0xff]  }
 0x11a   : > { %3572 = vmatprep.subr.bf16.mxu0 %v5473_v34  ;;  %3818 = vmatprep.subr.bf16.mxu1 %v5476_v35  ;;  %v6675_v34 = vrot.slane %v942_v29, %v6484_v50  ;;  %v5549_v35 = vld [vmem:[%s6406_s27 + $0x780] ss:$20 sps:$4 sm:$0xff]   ;;  %v5624_v29 = vld [vmem:[%s6406_s27 + $0x968] ss:$20 sps:$4 sm:$0xff]  }
 0x11d   : > { %3573 = vmatpush1.bf16.msra.mxu0 %v5471_v36  ;;  %3819 = vmatpush1.bf16.msra.mxu1 %v5474_v37  ;;  %v5557_v36 = vld [vmem:[%s6406_s27 + $0x7ac] ss:$20 sps:$4 sm:$0xff]   ;;  %v5560_v37 = vld [vmem:[%s6406_s27 + $0x7b4] ss:$20 sps:$4 sm:$0xff]  }
 0x11e   : > { %3574 = vmatprep.subr.bf16.mxu0 %v5479_v38  ;;  %3820 = vmatprep.subr.bf16.mxu1 %v5482_v39  ;;  %v6683_v38 = vcombine.high %v6675_v34, %v6675_v34  ;;  %v5555_v39 = vld [vmem:[%s6406_s27 + $0x7a8] ss:$20 sps:$4 sm:$0xff]  }
 0x121   : > { %3575 = vmatpush1.bf16.msra.mxu0 %v5477_v40  ;;  %3821 = vmatpush1.bf16.msra.mxu1 %v5480_v41  ;;  %v5558_v40 = vld [vmem:[%s6406_s27 + $0x7b0] ss:$20 sps:$4 sm:$0xff]   ;;  %v5563_v41 = vld [vmem:[%s6406_s27 + $0x7d4] ss:$20 sps:$4 sm:$0xff]  }
 0x122   : > { %3576 = vmatprep.subr.bf16.mxu0 %v5485_v42  ;;  %3822 = vmatprep.subr.bf16.mxu1 %v5488_v43  ;;  %v5566_v42 = vld [vmem:[%s6406_s27 + $0x7dc] ss:$20 sps:$4 sm:$0xff]  }
 0x123   : > { %v5561_v43 = vld [vmem:[%s6406_s27 + $0x7d0] ss:$20 sps:$4 sm:$0xff]  }
 0x125   : > { %3577 = vmatpush1.bf16.msra.mxu0 %v5483_v45  ;;  %3823 = vmatpush1.bf16.msra.mxu1 %v5486_v46  ;;  %v5564_v45 = vld [vmem:[%s6406_s27 + $0x7d8] ss:$20 sps:$4 sm:$0xff]   ;;  %v5569_v46 = vld [vmem:[%s6406_s27 + $0x7fc] ss:$20 sps:$4 sm:$0xff]  }
 0x126   : > { %3578 = vmatprep.subr.bf16.mxu0 %v5491_v47  ;;  %3824 = vmatprep.subr.bf16.mxu1 %v5494_v48  ;;  %v5572_v47 = vld [vmem:[%s6406_s27 + $0x804] ss:$20 sps:$4 sm:$0xff]  }
 0x127   : > { %v5567_v48 = vld [vmem:[%s6406_s27 + $0x7f8] ss:$20 sps:$4 sm:$0xff]  }
 0x129   : > { %3579 = vmatpush1.bf16.msra.mxu0 %v5489_v49  ;;  %3825 = vmatpush1.bf16.msra.mxu1 %v5492_v51  ;;  %v5570_v49 = vld [vmem:[%s6406_s27 + $0x800] ss:$20 sps:$4 sm:$0xff]   ;;  %v5575_v51 = vld [vmem:[%s6406_s27 + $0x824] ss:$20 sps:$4 sm:$0xff]  }
 0x12a   : > { %3580 = vmatprep.subr.bf16.mxu0 %v5497_v52  ;;  %3826 = vmatprep.subr.bf16.mxu1 %v5500_v53  ;;  %v5578_v52 = vld [vmem:[%s6406_s27 + $0x82c] ss:$20 sps:$4 sm:$0xff]  }
 0x12b   : > { %v5573_v53 = vld [vmem:[%s6406_s27 + $0x820] ss:$20 sps:$4 sm:$0xff]  }
 0x12d   : > { %3581 = vmatpush1.bf16.msra.mxu0 %v5495_v54  ;;  %3827 = vmatpush1.bf16.msra.mxu1 %v5498_v56  ;;  %v5576_v54 = vld [vmem:[%s6406_s27 + $0x828] ss:$20 sps:$4 sm:$0xff]   ;;  %v5581_v56 = vld [vmem:[%s6406_s27 + $0x84c] ss:$20 sps:$4 sm:$0xff]  }
 0x12e   : > { %3582 = vmatprep.subr.bf16.mxu0 %v5503_v57  ;;  %3828 = vmatprep.subr.bf16.mxu1 %v5506_v58  ;;  %v5584_v57 = vld [vmem:[%s6406_s27 + $0x854] ss:$20 sps:$4 sm:$0xff]  }
 0x12f   : > { %v5579_v58 = vld [vmem:[%s6406_s27 + $0x848] ss:$20 sps:$4 sm:$0xff]  }
 0x131   : > { %3583 = vmatpush1.bf16.msra.mxu0 %v5501_v60  ;;  %3829 = vmatpush1.bf16.msra.mxu1 %v5504_v61  ;;  %v5582_v60 = vld [vmem:[%s6406_s27 + $0x850] ss:$20 sps:$4 sm:$0xff]   ;;  %v5587_v61 = vld [vmem:[%s6406_s27 + $0x874] ss:$20 sps:$4 sm:$0xff]  }
 0x132   : > { %3584 = vmatprep.subr.bf16.mxu0 %v5509_v62  ;;  %3830 = vmatprep.subr.bf16.mxu1 %v5512_v63  ;;  %v5590_v62 = vld [vmem:[%s6406_s27 + $0x87c] ss:$20 sps:$4 sm:$0xff]  }
 0x133   : > { %v5585_v63 = vld [vmem:[%s6406_s27 + $0x870] ss:$20 sps:$4 sm:$0xff]  }
 0x135   : > { %3585 = vmatpush1.bf16.msra.mxu0 %v5507_v0  ;;  %3831 = vmatpush1.bf16.msra.mxu1 %v5510_v1  ;;  %v5588_v0 = vld [vmem:[%s6406_s27 + $0x878] ss:$20 sps:$4 sm:$0xff]   ;;  %v5593_v1 = vld [vmem:[%s6406_s27 + $0x89c] ss:$20 sps:$4 sm:$0xff]  }
 0x136   : > { %3586 = vmatprep.subr.bf16.mxu0 %v5515_v2  ;;  %3832 = vmatprep.subr.bf16.mxu1 %v5518_v3  ;;  %v5596_v2 = vld [vmem:[%s6406_s27 + $0x8a4] ss:$20 sps:$4 sm:$0xff]  }
 0x137   : > { %v5591_v3 = vld [vmem:[%s6406_s27 + $0x898] ss:$20 sps:$4 sm:$0xff]  }
 0x139   : > { %3587 = vmatpush1.bf16.msra.mxu0 %v5513_v4  ;;  %3833 = vmatpush1.bf16.msra.mxu1 %v5516_v5  ;;  %v5594_v4 = vld [vmem:[%s6406_s27 + $0x8a0] ss:$20 sps:$4 sm:$0xff]   ;;  %v5599_v5 = vld [vmem:[%s6406_s27 + $0x8c4] ss:$20 sps:$4 sm:$0xff]  }
 0x13a   : > { %3588 = vmatprep.subr.bf16.mxu0 %v5521_v6  ;;  %3834 = vmatprep.subr.bf16.mxu1 %v5524_v7  ;;  %v5602_v6 = vld [vmem:[%s6406_s27 + $0x8cc] ss:$20 sps:$4 sm:$0xff]  }
 0x13b   : > { %v5597_v7 = vld [vmem:[%s6406_s27 + $0x8c0] ss:$20 sps:$4 sm:$0xff]  }
 0x13d   : > { %3589 = vmatpush1.bf16.msra.mxu0 %v5519_v8  ;;  %3835 = vmatpush1.bf16.msra.mxu1 %v5522_v9  ;;  %v5600_v8 = vld [vmem:[%s6406_s27 + $0x8c8] ss:$20 sps:$4 sm:$0xff]   ;;  %v5605_v9 = vld [vmem:[%s6406_s27 + $0x8ec] ss:$20 sps:$4 sm:$0xff]  }
 0x13e   : > { %3590 = vmatprep.subr.bf16.mxu0 %v5527_v10  ;;  %3836 = vmatprep.subr.bf16.mxu1 %v5530_v11  ;;  %v5608_v10 = vld [vmem:[%s6406_s27 + $0x8f4] ss:$20 sps:$4 sm:$0xff]  }
 0x13f   : > { %v5603_v11 = vld [vmem:[%s6406_s27 + $0x8e8] ss:$20 sps:$4 sm:$0xff]  }
 0x141   : > { %3591 = vmatpush1.bf16.msra.mxu0 %v5525_v12  ;;  %3837 = vmatpush1.bf16.msra.mxu1 %v5528_v14  ;;  %v5606_v12 = vld [vmem:[%s6406_s27 + $0x8f0] ss:$20 sps:$4 sm:$0xff]   ;;  %v5611_v14 = vld [vmem:[%s6406_s27 + $0x914] ss:$20 sps:$4 sm:$0xff]  }
 0x142   : > { %3592 = vmatprep.subr.bf16.mxu0 %v5533_v15  ;;  %3838 = vmatprep.subr.bf16.mxu1 %v5536_v16  ;;  %v5614_v15 = vld [vmem:[%s6406_s27 + $0x91c] ss:$20 sps:$4 sm:$0xff]  }
 0x143   : > { %v5609_v16 = vld [vmem:[%s6406_s27 + $0x910] ss:$20 sps:$4 sm:$0xff]  }
 0x145   : > { %3593 = vmatpush1.bf16.msra.mxu0 %v5531_v17  ;;  %3839 = vmatpush1.bf16.msra.mxu1 %v5534_v19  ;;  %v5612_v17 = vld [vmem:[%s6406_s27 + $0x918] ss:$20 sps:$4 sm:$0xff]   ;;  %v5617_v19 = vld [vmem:[%s6406_s27 + $0x93c] ss:$20 sps:$4 sm:$0xff]  }
 0x146   : > { %3594 = vmatprep.subr.bf16.mxu0 %v5539_v20  ;;  %3840 = vmatprep.subr.bf16.mxu1 %v5542_v21  ;;  %v5620_v20 = vld [vmem:[%s6406_s27 + $0x944] ss:$20 sps:$4 sm:$0xff]  }
 0x147   : > { %v5615_v21 = vld [vmem:[%s6406_s27 + $0x938] ss:$20 sps:$4 sm:$0xff]  }
 0x149   : > { %3595 = vmatpush1.bf16.msra.mxu0 %v5537_v22  ;;  %3841 = vmatpush1.bf16.msra.mxu1 %v5540_v24  ;;  %v5618_v22 = vld [vmem:[%s6406_s27 + $0x940] ss:$20 sps:$4 sm:$0xff]   ;;  %v5623_v24 = vld [vmem:[%s6406_s27 + $0x964] ss:$20 sps:$4 sm:$0xff]  }
 0x14a   : > { %3596 = vmatprep.subr.bf16.mxu0 %v5545_v25  ;;  %3842 = vmatprep.subr.bf16.mxu1 %v5548_v28  ;;  %v5626_v25 = vld [vmem:[%s6406_s27 + $0x96c] ss:$20 sps:$4 sm:$0xff]  }
 0x14b   : > { %v5621_v28 = vld [vmem:[%s6406_s27 + $0x960] ss:$20 sps:$4 sm:$0xff]  }
 0x14d   : > { %3597 = vmatpush1.bf16.msra.mxu0 %v5543_v30  ;;  %3843 = vmatpush1.bf16.msra.mxu1 %v5546_v31  ;;  %v5629_v30 = vld [vmem:[%s6406_s27 + $0x98c] ss:$20 sps:$4 sm:$0xff]   ;;  %v5632_v31 = vld [vmem:[%s6406_s27 + $0x994] ss:$20 sps:$4 sm:$0xff]  }
 0x14e   : > { %3607 = vmatprep.subr.bf16.mxu0 %v5551_v32  ;;  %3853 = vmatprep.subr.bf16.mxu1 %v5554_v33  ;;  %v5627_v32 = vld [vmem:[%s6406_s27 + $0x988] ss:$20 sps:$4 sm:$0xff]   ;;  %v5630_v33 = vld [vmem:[%s6406_s27 + $0x990] ss:$20 sps:$4 sm:$0xff]  }
 0x150   : > { %3599 = vmatmul.mubr.bf16.vlgmr.msra.gmra.mrb[0].mxu0 %v6602_v26  ;;  %3845 = vmatmul.mubr.bf16.vlgmr.msra.gmra.mrb[0].mxu1 %v6602_v26 }
 0x151   : > { %3608 = vmatpush1.bf16.msra.mxu0 %v5549_v35  ;;  %3854 = vmatpush1.bf16.msra.mxu1 %v5552_v23  ;;  %v5635_v35 = vld [vmem:[%s6406_s27 + $0x9b4] ss:$20 sps:$4 sm:$0xff]   ;;  %v5638_v23 = vld [vmem:[%s6406_s27 + $0x9bc] ss:$20 sps:$4 sm:$0xff]  }
 0x152   : > { %3609 = vmatprep.subr.bf16.mxu0 %v5557_v36  ;;  %3855 = vmatprep.subr.bf16.mxu1 %v5560_v37  ;;  %v5633_v36 = vld [vmem:[%s6406_s27 + $0x9b0] ss:$20 sps:$4 sm:$0xff]   ;;  %v5636_v37 = vld [vmem:[%s6406_s27 + $0x9b8] ss:$20 sps:$4 sm:$0xff]  }
 0x153   : > { %3639 = vmatprep.mubr.bf16.mxu0 %v6683_v38  ;;  %3885 = vmatprep.mubr.bf16.mxu1 %v6683_v38 }
 0x155   : > { %3610 = vmatpush1.bf16.msra.mxu0 %v5555_v39  ;;  %3856 = vmatpush1.bf16.msra.mxu1 %v5558_v40  ;;  %v5641_v39 = vld [vmem:[%s6406_s27 + $0x9dc] ss:$20 sps:$4 sm:$0xff]   ;;  %v5644_v40 = vld [vmem:[%s6406_s27 + $0x9e4] ss:$20 sps:$4 sm:$0xff]  }
 0x156   : > { %3611 = vmatprep.subr.bf16.mxu0 %v5563_v41  ;;  %3857 = vmatprep.subr.bf16.mxu1 %v5566_v42  ;;  %v5639_v41 = vld [vmem:[%s6406_s27 + $0x9d8] ss:$20 sps:$4 sm:$0xff]   ;;  %v6747_v42 = vld [vmem:[%s6433_s13 + $0x10] sm:$0xff] }
 0x159   : > { %3612 = vmatpush1.bf16.msra.mxu0 %v5561_v43  ;;  %3858 = vmatpush1.bf16.msra.mxu1 %v5564_v45  ;;  %v5642_v43 = vld [vmem:[%s6406_s27 + $0x9e0] ss:$20 sps:$4 sm:$0xff]   ;;  %v5648_v45 = vld [vmem:[%s6406_s27 + $0xa04] ss:$20 sps:$4 sm:$0xff]  }
 0x15a   : > { %3613 = vmatprep.subr.bf16.mxu0 %v5569_v46  ;;  %3859 = vmatprep.subr.bf16.mxu1 %v5572_v47  ;;  %v5651_v46 = vld [vmem:[%s6406_s27 + $0xa0c] ss:$20 sps:$4 sm:$0xff]   ;;  %v6754_v47 = vrot.slane %v6747_v42, %v6484_v50 }
 0x15d   : > { %3614 = vmatpush1.bf16.msra.mxu0 %v5567_v48  ;;  %3860 = vmatpush1.bf16.msra.mxu1 %v5570_v49  ;;  %v5646_v48 = vld [vmem:[%s6406_s27 + $0xa00] ss:$20 sps:$4 sm:$0xff]   ;;  %v5649_v49 = vld [vmem:[%s6406_s27 + $0xa08] ss:$20 sps:$4 sm:$0xff]  }
 0x15e   : > { %3615 = vmatprep.subr.bf16.mxu0 %v5575_v51  ;;  %3861 = vmatprep.subr.bf16.mxu1 %v5578_v52  ;;  %v5654_v51 = vld [vmem:[%s6406_s27 + $0xa2c] ss:$20 sps:$4 sm:$0xff]   ;;  %v5657_v52 = vld [vmem:[%s6406_s27 + $0xa34] ss:$20 sps:$4 sm:$0xff]  }
 0x161   : > { %3616 = vmatpush1.bf16.msra.mxu0 %v5573_v53  ;;  %3862 = vmatpush1.bf16.msra.mxu1 %v5576_v54  ;;  %v5652_v53 = vld [vmem:[%s6406_s27 + $0xa28] ss:$20 sps:$4 sm:$0xff]   ;;  %v6763_v54 = vcombine.high %v6754_v47, %v6754_v47 }
 0x162   : > { %3617 = vmatprep.subr.bf16.mxu0 %v5581_v56  ;;  %3863 = vmatprep.subr.bf16.mxu1 %v5584_v57  ;;  %v5655_v56 = vld [vmem:[%s6406_s27 + $0xa30] ss:$20 sps:$4 sm:$0xff]   ;;  %v5660_v57 = vld [vmem:[%s6406_s27 + $0xa54] ss:$20 sps:$4 sm:$0xff]  }
 0x165   : > { %3618 = vmatpush1.bf16.msra.mxu0 %v5579_v58  ;;  %3864 = vmatpush1.bf16.msra.mxu1 %v5582_v60  ;;  %v5663_v58 = vld [vmem:[%s6406_s27 + $0xa5c] ss:$20 sps:$4 sm:$0xff]  }
 0x166   : > { %3619 = vmatprep.subr.bf16.mxu0 %v5587_v61  ;;  %3865 = vmatprep.subr.bf16.mxu1 %v5590_v62  ;;  %v5658_v60 = vld [vmem:[%s6406_s27 + $0xa50] ss:$20 sps:$4 sm:$0xff]   ;;  %v5661_v61 = vld [vmem:[%s6406_s27 + $0xa58] ss:$20 sps:$4 sm:$0xff]  }
 0x167   : > { %v5666_v62 = vld [vmem:[%s6406_s27 + $0xa7c] ss:$20 sps:$4 sm:$0xff]  }
 0x169   : > { %3620 = vmatpush1.bf16.msra.mxu0 %v5585_v63  ;;  %3866 = vmatpush1.bf16.msra.mxu1 %v5588_v0  ;;  %v5669_v63 = vld [vmem:[%s6406_s27 + $0xa84] ss:$20 sps:$4 sm:$0xff]  }
 0x16a   : > { %3621 = vmatprep.subr.bf16.mxu0 %v5593_v1  ;;  %3867 = vmatprep.subr.bf16.mxu1 %v5596_v2  ;;  %v5664_v0 = vld [vmem:[%s6406_s27 + $0xa78] ss:$20 sps:$4 sm:$0xff]   ;;  %v5667_v1 = vld [vmem:[%s6406_s27 + $0xa80] ss:$20 sps:$4 sm:$0xff]  }
 0x16b   : > { %v5672_v2 = vld [vmem:[%s6406_s27 + $0xaa4] ss:$20 sps:$4 sm:$0xff]  }
 0x16d   : > { %3622 = vmatpush1.bf16.msra.mxu0 %v5591_v3  ;;  %3868 = vmatpush1.bf16.msra.mxu1 %v5594_v4  ;;  %v5675_v3 = vld [vmem:[%s6406_s27 + $0xaac] ss:$20 sps:$4 sm:$0xff]  }
 0x16e   : > { %3623 = vmatprep.subr.bf16.mxu0 %v5599_v5  ;;  %3869 = vmatprep.subr.bf16.mxu1 %v5602_v6  ;;  %v5670_v4 = vld [vmem:[%s6406_s27 + $0xaa0] ss:$20 sps:$4 sm:$0xff]   ;;  %v5673_v5 = vld [vmem:[%s6406_s27 + $0xaa8] ss:$20 sps:$4 sm:$0xff]  }
 0x16f   : > { %v5678_v6 = vld [vmem:[%s6406_s27 + $0xacc] ss:$20 sps:$4 sm:$0xff]  }
 0x171   : > { %3624 = vmatpush1.bf16.msra.mxu0 %v5597_v7  ;;  %3870 = vmatpush1.bf16.msra.mxu1 %v5600_v8  ;;  %v5681_v7 = vld [vmem:[%s6406_s27 + $0xad4] ss:$20 sps:$4 sm:$0xff]  }
 0x172   : > { %3625 = vmatprep.subr.bf16.mxu0 %v5605_v9  ;;  %3871 = vmatprep.subr.bf16.mxu1 %v5608_v10  ;;  %v5676_v8 = vld [vmem:[%s6406_s27 + $0xac8] ss:$20 sps:$4 sm:$0xff]   ;;  %v5679_v9 = vld [vmem:[%s6406_s27 + $0xad0] ss:$20 sps:$4 sm:$0xff]  }
 0x173   : > { %v5684_v10 = vld [vmem:[%s6406_s27 + $0xaf4] ss:$20 sps:$4 sm:$0xff]  }
 0x175   : > { %3626 = vmatpush1.bf16.msra.mxu0 %v5603_v11  ;;  %3872 = vmatpush1.bf16.msra.mxu1 %v5606_v12  ;;  %v5687_v11 = vld [vmem:[%s6406_s27 + $0xafc] ss:$20 sps:$4 sm:$0xff]  }
 0x176   : > { %3627 = vmatprep.subr.bf16.mxu0 %v5611_v14  ;;  %3873 = vmatprep.subr.bf16.mxu1 %v5614_v15  ;;  %v5682_v12 = vld [vmem:[%s6406_s27 + $0xaf0] ss:$20 sps:$4 sm:$0xff]   ;;  %v5685_v14 = vld [vmem:[%s6406_s27 + $0xaf8] ss:$20 sps:$4 sm:$0xff]  }
 0x177   : > { %v5690_v15 = vld [vmem:[%s6406_s27 + $0xb1c] ss:$20 sps:$4 sm:$0xff]  }
 0x179   : > { %3628 = vmatpush1.bf16.msra.mxu0 %v5609_v16  ;;  %3874 = vmatpush1.bf16.msra.mxu1 %v5612_v17  ;;  %v5693_v16 = vld [vmem:[%s6406_s27 + $0xb24] ss:$20 sps:$4 sm:$0xff]  }
 0x17a   : > { %3629 = vmatprep.subr.bf16.mxu0 %v5617_v19  ;;  %3875 = vmatprep.subr.bf16.mxu1 %v5620_v20  ;;  %v5688_v17 = vld [vmem:[%s6406_s27 + $0xb18] ss:$20 sps:$4 sm:$0xff]   ;;  %v5691_v19 = vld [vmem:[%s6406_s27 + $0xb20] ss:$20 sps:$4 sm:$0xff]  }
 0x17b   : > { %v5696_v20 = vld [vmem:[%s6406_s27 + $0xb44] ss:$20 sps:$4 sm:$0xff]  }
 0x17d   : > { %3630 = vmatpush1.bf16.msra.mxu0 %v5615_v21  ;;  %3876 = vmatpush1.bf16.msra.mxu1 %v5618_v22  ;;  %v5699_v21 = vld [vmem:[%s6406_s27 + $0xb4c] ss:$20 sps:$4 sm:$0xff]  }
 0x17e   : > { %3631 = vmatprep.subr.bf16.mxu0 %v5623_v24  ;;  %3877 = vmatprep.subr.bf16.mxu1 %v5626_v25  ;;  %v5694_v22 = vld [vmem:[%s6406_s27 + $0xb40] ss:$20 sps:$4 sm:$0xff]   ;;  %v5697_v24 = vld [vmem:[%s6406_s27 + $0xb48] ss:$20 sps:$4 sm:$0xff]  }
 0x17f   : > { %v5702_v25 = vld [vmem:[%s6406_s27 + $0xb6c] ss:$20 sps:$4 sm:$0xff]  }
 0x181   : > { %3632 = vmatpush1.bf16.msra.mxu0 %v5621_v28  ;;  %3878 = vmatpush1.bf16.msra.mxu1 %v5624_v29  ;;  %v5705_v28 = vld [vmem:[%s6406_s27 + $0xb74] ss:$20 sps:$4 sm:$0xff]  }
 0x182   : > { %3633 = vmatprep.subr.bf16.mxu0 %v5629_v30  ;;  %3879 = vmatprep.subr.bf16.mxu1 %v5632_v31  ;;  %v5700_v29 = vld [vmem:[%s6406_s27 + $0xb68] ss:$20 sps:$4 sm:$0xff]   ;;  %v5703_v30 = vld [vmem:[%s6406_s27 + $0xb70] ss:$20 sps:$4 sm:$0xff]  }
 0x183   : > { %v5708_v31 = vld [vmem:[%s6406_s27 + $0xb94] ss:$20 sps:$4 sm:$0xff]  }
 0x185   : > { %3634 = vmatpush1.bf16.msra.mxu0 %v5627_v32  ;;  %3880 = vmatpush1.bf16.msra.mxu1 %v5630_v33  ;;  %v5711_v32 = vld [vmem:[%s6406_s27 + $0xb9c] ss:$20 sps:$4 sm:$0xff]  }
 0x186   : > { %3635 = vmatprep.subr.bf16.mxu0 %v5635_v35  ;;  %3881 = vmatprep.subr.bf16.mxu1 %v5638_v23  ;;  %v5706_v33 = vld [vmem:[%s6406_s27 + $0xb90] ss:$20 sps:$4 sm:$0xff]   ;;  %v5709_v35 = vld [vmem:[%s6406_s27 + $0xb98] ss:$20 sps:$4 sm:$0xff]  }
 0x187   : > { %v5714_v23 = vld [vmem:[%s6406_s27 + $0xbbc] ss:$20 sps:$4 sm:$0xff]  }
 0x189   : > { %3636 = vmatpush1.bf16.msra.mxu0 %v5633_v36  ;;  %3882 = vmatpush1.bf16.msra.mxu1 %v5636_v37  ;;  %v5717_v36 = vld [vmem:[%s6406_s27 + $0xbc4] ss:$20 sps:$4 sm:$0xff]  }
 0x18a   : > { %3637 = vmatprep.subr.bf16.mxu0 %v5641_v39  ;;  %3883 = vmatprep.subr.bf16.mxu1 %v5644_v40  ;;  %v5712_v37 = vld [vmem:[%s6406_s27 + $0xbb8] ss:$20 sps:$4 sm:$0xff]   ;;  %v5715_v39 = vld [vmem:[%s6406_s27 + $0xbc0] ss:$20 sps:$4 sm:$0xff]  }
 0x18b   : > { %v5720_v40 = vld [vmem:[%s6406_s27 + $0xbe4] ss:$20 sps:$4 sm:$0xff]  }
 0x18d   : > { %3638 = vmatpush1.bf16.msra.mxu0 %v5639_v41  ;;  %3884 = vmatpush1.bf16.msra.mxu1 %v5642_v43  ;;  %v5723_v41 = vld [vmem:[%s6406_s27 + $0xbec] ss:$20 sps:$4 sm:$0xff]  }
 0x18e   : > { %3648 = vmatprep.subr.bf16.mxu0 %v5648_v45  ;;  %3894 = vmatprep.subr.bf16.mxu1 %v5651_v46  ;;  %v5718_v43 = vld [vmem:[%s6406_s27 + $0xbe0] ss:$20 sps:$4 sm:$0xff]   ;;  %v5721_v45 = vld [vmem:[%s6406_s27 + $0xbe8] ss:$20 sps:$4 sm:$0xff]  }
 0x18f   : > { %v5726_v46 = vld [vmem:[%s6406_s27 + $0xc0c] ss:$20 sps:$4 sm:$0xff]  }
 0x190   : > { %3640 = vmatmul.mubr.bf16.vlgmr.msra.gmra.mrb[0].mxu0 %v6675_v34  ;;  %3886 = vmatmul.mubr.bf16.vlgmr.msra.gmra.mrb[0].mxu1 %v6675_v34 }
 0x191   : > { %3649 = vmatpush1.bf16.msra.mxu0 %v5646_v48  ;;  %3895 = vmatpush1.bf16.msra.mxu1 %v5649_v49  ;;  %v5729_v48 = vld [vmem:[%s6406_s27 + $0xc14] ss:$20 sps:$4 sm:$0xff]  }
 0x192   : > { %3650 = vmatprep.subr.bf16.mxu0 %v5654_v51  ;;  %3896 = vmatprep.subr.bf16.mxu1 %v5657_v52  ;;  %v5724_v49 = vld [vmem:[%s6406_s27 + $0xc08] ss:$20 sps:$4 sm:$0xff]   ;;  %v5727_v51 = vld [vmem:[%s6406_s27 + $0xc10] ss:$20 sps:$4 sm:$0xff]  }
 0x193   : > { %3680 = vmatprep.mubr.bf16.mxu0 %v6763_v54  ;;  %3926 = vmatprep.mubr.bf16.mxu1 %v6763_v54  ;;  %v5732_v52 = vld [vmem:[%s6406_s27 + $0xc34] ss:$20 sps:$4 sm:$0xff]  }
 0x195   : > { %3651 = vmatpush1.bf16.msra.mxu0 %v5652_v53  ;;  %3897 = vmatpush1.bf16.msra.mxu1 %v5655_v56  ;;  %v5735_v53 = vld [vmem:[%s6406_s27 + $0xc3c] ss:$20 sps:$4 sm:$0xff]  }
 0x196   : > { %3652 = vmatprep.subr.bf16.mxu0 %v5660_v57  ;;  %3898 = vmatprep.subr.bf16.mxu1 %v5663_v58  ;;  %v5730_v56 = vld [vmem:[%s6406_s27 + $0xc30] ss:$20 sps:$4 sm:$0xff]   ;;  %v5733_v57 = vld [vmem:[%s6406_s27 + $0xc38] ss:$20 sps:$4 sm:$0xff]  }
 0x197   : > { %v5738_v58 = vld [vmem:[%s6406_s27 + $0xc5c] ss:$20 sps:$4 sm:$0xff]  }
 0x199   : > { %3653 = vmatpush1.bf16.msra.mxu0 %v5658_v60  ;;  %3899 = vmatpush1.bf16.msra.mxu1 %v5661_v61  ;;  %v5741_v60 = vld [vmem:[%s6406_s27 + $0xc64] ss:$20 sps:$4 sm:$0xff]  }
 0x19a   : > { %3654 = vmatprep.subr.bf16.mxu0 %v5666_v62  ;;  %3900 = vmatprep.subr.bf16.mxu1 %v5669_v63  ;;  %v5736_v61 = vld [vmem:[%s6406_s27 + $0xc58] ss:$20 sps:$4 sm:$0xff]   ;;  %v959_v62 = vcombine.high %v6747_v42, %v6747_v42  ;;  %v5739_v63 = vld [vmem:[%s6406_s27 + $0xc60] ss:$20 sps:$4 sm:$0xff]  }
 0x19b   : > { %v5750_v42 = vld [vmem:[%s6406_s27 + $0xcac] ss:$20 sps:$4 sm:$0xff]  }
 0x19d   : > { %3655 = vmatpush1.bf16.msra.mxu0 %v5664_v0  ;;  %3901 = vmatpush1.bf16.msra.mxu1 %v5667_v1  ;;  %v5744_v0 = vld [vmem:[%s6406_s27 + $0xc84] ss:$20 sps:$4 sm:$0xff]   ;;  %v5747_v1 = vld [vmem:[%s6406_s27 + $0xc8c] ss:$20 sps:$4 sm:$0xff]  }
 0x19e   : > { %3656 = vmatprep.subr.bf16.mxu0 %v5672_v2  ;;  %3902 = vmatprep.subr.bf16.mxu1 %v5675_v3  ;;  %v5742_v2 = vld [vmem:[%s6406_s27 + $0xc80] ss:$20 sps:$4 sm:$0xff]   ;;  %v6832_v3 = vrot.slane %v959_v62, %v6484_v50  ;;  %v5751_v50 = vld [vmem:[%s6406_s27 + $0xcb0] ss:$20 sps:$4 sm:$0xff]  }
 0x19f   : > { %v5819_v62 = vld [vmem:[%s6406_s27 + $0xe6c] ss:$20 sps:$4 sm:$0xff]  }
 0x1a1   : > { %3657 = vmatpush1.bf16.msra.mxu0 %v5670_v4  ;;  %3903 = vmatpush1.bf16.msra.mxu1 %v5673_v5  ;;  %v5745_v4 = vld [vmem:[%s6406_s27 + $0xc88] ss:$20 sps:$4 sm:$0xff]  }
 0x1a2   : > { %3658 = vmatprep.subr.bf16.mxu0 %v5678_v6  ;;  %3904 = vmatprep.subr.bf16.mxu1 %v5681_v7  ;;  %v5753_v5 = vld [vmem:[%s6406_s27 + $0xcb4] ss:$20 sps:$4 sm:$0xff]   ;;  %v6840_v7 = vcombine.high %v6832_v3, %v6832_v3 }
 0x1a3   : > { %v5748_v6 = vld [vmem:[%s6406_s27 + $0xca8] ss:$20 sps:$4 sm:$0xff]  }
 0x1a5   : > { %3659 = vmatpush1.bf16.msra.mxu0 %v5676_v8  ;;  %3905 = vmatpush1.bf16.msra.mxu1 %v5679_v9  ;;  %v5756_v8 = vld [vmem:[%s6406_s27 + $0xcd4] ss:$20 sps:$4 sm:$0xff]   ;;  %v5759_v9 = vld [vmem:[%s6406_s27 + $0xcdc] ss:$20 sps:$4 sm:$0xff]  }
 0x1a6   : > { %3660 = vmatprep.subr.bf16.mxu0 %v5684_v10  ;;  %3906 = vmatprep.subr.bf16.mxu1 %v5687_v11  ;;  %v5754_v10 = vld [vmem:[%s6406_s27 + $0xcd0] ss:$20 sps:$4 sm:$0xff]   ;;  %v5757_v11 = vld [vmem:[%s6406_s27 + $0xcd8] ss:$20 sps:$4 sm:$0xff]  }
 0x1a9   : > { %3661 = vmatpush1.bf16.msra.mxu0 %v5682_v12  ;;  %3907 = vmatpush1.bf16.msra.mxu1 %v5685_v14  ;;  %v5762_v12 = vld [vmem:[%s6406_s27 + $0xcfc] ss:$20 sps:$4 sm:$0xff]   ;;  %v5765_v14 = vld [vmem:[%s6406_s27 + $0xd04] ss:$20 sps:$4 sm:$0xff]  }
 0x1aa   : > { %3662 = vmatprep.subr.bf16.mxu0 %v5690_v15  ;;  %3908 = vmatprep.subr.bf16.mxu1 %v5693_v16  ;;  %v5760_v15 = vld [vmem:[%s6406_s27 + $0xcf8] ss:$20 sps:$4 sm:$0xff]   ;;  %v5763_v16 = vld [vmem:[%s6406_s27 + $0xd00] ss:$20 sps:$4 sm:$0xff]  }
 0x1ad   : > { %3663 = vmatpush1.bf16.msra.mxu0 %v5688_v17  ;;  %3909 = vmatpush1.bf16.msra.mxu1 %v5691_v19  ;;  %v5768_v17 = vld [vmem:[%s6406_s27 + $0xd24] ss:$20 sps:$4 sm:$0xff]   ;;  %v5771_v19 = vld [vmem:[%s6406_s27 + $0xd2c] ss:$20 sps:$4 sm:$0xff]  }
 0x1ae   : > { %3664 = vmatprep.subr.bf16.mxu0 %v5696_v20  ;;  %3910 = vmatprep.subr.bf16.mxu1 %v5699_v21  ;;  %v5766_v20 = vld [vmem:[%s6406_s27 + $0xd20] ss:$20 sps:$4 sm:$0xff]   ;;  %v5769_v21 = vld [vmem:[%s6406_s27 + $0xd28] ss:$20 sps:$4 sm:$0xff]  }
 0x1b1   : > { %3665 = vmatpush1.bf16.msra.mxu0 %v5694_v22  ;;  %3911 = vmatpush1.bf16.msra.mxu1 %v5697_v24  ;;  %v5774_v22 = vld [vmem:[%s6406_s27 + $0xd4c] ss:$20 sps:$4 sm:$0xff]   ;;  %v5777_v24 = vld [vmem:[%s6406_s27 + $0xd54] ss:$20 sps:$4 sm:$0xff]  }
 0x1b2   : > { %3666 = vmatprep.subr.bf16.mxu0 %v5702_v25  ;;  %3912 = vmatprep.subr.bf16.mxu1 %v5705_v28  ;;  %v5772_v25 = vld [vmem:[%s6406_s27 + $0xd48] ss:$20 sps:$4 sm:$0xff]   ;;  %v5775_v28 = vld [vmem:[%s6406_s27 + $0xd50] ss:$20 sps:$4 sm:$0xff]  }
 0x1b5   : > { %3667 = vmatpush1.bf16.msra.mxu0 %v5700_v29  ;;  %3913 = vmatpush1.bf16.msra.mxu1 %v5703_v30  ;;  %v5780_v29 = vld [vmem:[%s6406_s27 + $0xd74] ss:$20 sps:$4 sm:$0xff]   ;;  %v5783_v30 = vld [vmem:[%s6406_s27 + $0xd7c] ss:$20 sps:$4 sm:$0xff]  }
 0x1b6   : > { %3668 = vmatprep.subr.bf16.mxu0 %v5708_v31  ;;  %3914 = vmatprep.subr.bf16.mxu1 %v5711_v32  ;;  %v5778_v31 = vld [vmem:[%s6406_s27 + $0xd70] ss:$20 sps:$4 sm:$0xff]   ;;  %v5781_v32 = vld [vmem:[%s6406_s27 + $0xd78] ss:$20 sps:$4 sm:$0xff]  }
 0x1b9   : > { %3669 = vmatpush1.bf16.msra.mxu0 %v5706_v33  ;;  %3915 = vmatpush1.bf16.msra.mxu1 %v5709_v35  ;;  %v5786_v33 = vld [vmem:[%s6406_s27 + $0xd9c] ss:$20 sps:$4 sm:$0xff]   ;;  %v5789_v35 = vld [vmem:[%s6406_s27 + $0xda4] ss:$20 sps:$4 sm:$0xff]  }
 0x1ba   : > { %3670 = vmatprep.subr.bf16.mxu0 %v5714_v23  ;;  %3916 = vmatprep.subr.bf16.mxu1 %v5717_v36  ;;  %v5784_v23 = vld [vmem:[%s6406_s27 + $0xd98] ss:$20 sps:$4 sm:$0xff]   ;;  %v5787_v36 = vld [vmem:[%s6406_s27 + $0xda0] ss:$20 sps:$4 sm:$0xff]  }
 0x1bd   : > { %3671 = vmatpush1.bf16.msra.mxu0 %v5712_v37  ;;  %3917 = vmatpush1.bf16.msra.mxu1 %v5715_v39  ;;  %v5792_v37 = vld [vmem:[%s6406_s27 + $0xdc4] ss:$20 sps:$4 sm:$0xff]   ;;  %v5795_v39 = vld [vmem:[%s6406_s27 + $0xdcc] ss:$20 sps:$4 sm:$0xff]  }
 0x1be   : > { %3672 = vmatprep.subr.bf16.mxu0 %v5720_v40  ;;  %3918 = vmatprep.subr.bf16.mxu1 %v5723_v41  ;;  %v5790_v40 = vld [vmem:[%s6406_s27 + $0xdc0] ss:$20 sps:$4 sm:$0xff]   ;;  %v5793_v41 = vld [vmem:[%s6406_s27 + $0xdc8] ss:$20 sps:$4 sm:$0xff]  }
 0x1c1   : > { %3673 = vmatpush1.bf16.msra.mxu0 %v5718_v43  ;;  %3919 = vmatpush1.bf16.msra.mxu1 %v5721_v45  ;;  %v5798_v43 = vld [vmem:[%s6406_s27 + $0xdec] ss:$20 sps:$4 sm:$0xff]   ;;  %v5801_v45 = vld [vmem:[%s6406_s27 + $0xdf4] ss:$20 sps:$4 sm:$0xff]  }
 0x1c2   : > { %3674 = vmatprep.subr.bf16.mxu0 %v5726_v46  ;;  %3920 = vmatprep.subr.bf16.mxu1 %v5729_v48  ;;  %v5796_v46 = vld [vmem:[%s6406_s27 + $0xde8] ss:$20 sps:$4 sm:$0xff]   ;;  %v5799_v48 = vld [vmem:[%s6406_s27 + $0xdf0] ss:$20 sps:$4 sm:$0xff]  }
 0x1c5   : > { %3675 = vmatpush1.bf16.msra.mxu0 %v5724_v49  ;;  %3921 = vmatpush1.bf16.msra.mxu1 %v5727_v51  ;;  %v5804_v49 = vld [vmem:[%s6406_s27 + $0xe14] ss:$20 sps:$4 sm:$0xff]   ;;  %v5807_v51 = vld [vmem:[%s6406_s27 + $0xe1c] ss:$20 sps:$4 sm:$0xff]  }
 0x1c6   : > { %3676 = vmatprep.subr.bf16.mxu0 %v5732_v52  ;;  %3922 = vmatprep.subr.bf16.mxu1 %v5735_v53  ;;  %v5802_v52 = vld [vmem:[%s6406_s27 + $0xe10] ss:$20 sps:$4 sm:$0xff]   ;;  %v5805_v53 = vld [vmem:[%s6406_s27 + $0xe18] ss:$20 sps:$4 sm:$0xff]  }
 0x1c9   : > { %3677 = vmatpush1.bf16.msra.mxu0 %v5730_v56  ;;  %3923 = vmatpush1.bf16.msra.mxu1 %v5733_v57  ;;  %v5810_v56 = vld [vmem:[%s6406_s27 + $0xe3c] ss:$20 sps:$4 sm:$0xff]   ;;  %v5813_v57 = vld [vmem:[%s6406_s27 + $0xe44] ss:$20 sps:$4 sm:$0xff]  }
 0x1ca   : > { %3678 = vmatprep.subr.bf16.mxu0 %v5738_v58  ;;  %3924 = vmatprep.subr.bf16.mxu1 %v5741_v60  ;;  %v5808_v58 = vld [vmem:[%s6406_s27 + $0xe38] ss:$20 sps:$4 sm:$0xff]   ;;  %v5811_v60 = vld [vmem:[%s6406_s27 + $0xe40] ss:$20 sps:$4 sm:$0xff]  }
 0x1cd   : > { %3679 = vmatpush1.bf16.msra.mxu0 %v5736_v61  ;;  %3925 = vmatpush1.bf16.msra.mxu1 %v5739_v63  ;;  %v5816_v61 = vld [vmem:[%s6406_s27 + $0xe64] ss:$20 sps:$4 sm:$0xff]   ;;  %v5814_v63 = vld [vmem:[%s6406_s27 + $0xe60] ss:$20 sps:$4 sm:$0xff]  }
 0x1ce   : > { %3689 = vmatprep.subr.bf16.mxu0 %v5744_v0  ;;  %3935 = vmatprep.subr.bf16.mxu1 %v5747_v1  ;;  %v5817_v0 = vld [vmem:[%s6406_s27 + $0xe68] ss:$20 sps:$4 sm:$0xff]   ;;  %v5822_v1 = vld [vmem:[%s6406_s27 + $0xe8c] ss:$20 sps:$4 sm:$0xff]  }
 0x1d0   : > { %3681 = vmatmul.mubr.bf16.vlgmr.msra.gmra.mrb[0].mxu0 %v6754_v47  ;;  %3927 = vmatmul.mubr.bf16.vlgmr.msra.gmra.mrb[0].mxu1 %v6754_v47 }
 0x1d1   : > { %3690 = vmatpush1.bf16.msra.mxu0 %v5742_v2  ;;  %3936 = vmatpush1.bf16.msra.mxu1 %v5745_v4  ;;  %v5825_v2 = vld [vmem:[%s6406_s27 + $0xe94] ss:$20 sps:$4 sm:$0xff]  }
 0x1d2   : > { %3691 = vmatprep.subr.bf16.mxu0 %v5750_v42  ;;  %3937 = vmatprep.subr.bf16.mxu1 %v5753_v5  ;;  %v5820_v4 = vld [vmem:[%s6406_s27 + $0xe88] ss:$20 sps:$4 sm:$0xff]   ;;  %v5823_v42 = vld [vmem:[%s6406_s27 + $0xe90] ss:$20 sps:$4 sm:$0xff]  }
 0x1d3   : > { %3721 = vmatprep.mubr.bf16.mxu0 %v6840_v7  ;;  %3967 = vmatprep.mubr.bf16.mxu1 %v6840_v7  ;;  %v5828_v5 = vld [vmem:[%s6406_s27 + $0xeb4] ss:$20 sps:$4 sm:$0xff]  }
 0x1d5   : > { %3692 = vmatpush1.bf16.msra.mxu0 %v5748_v6  ;;  %3938 = vmatpush1.bf16.msra.mxu1 %v5751_v50  ;;  %v5831_v6 = vld [vmem:[%s6406_s27 + $0xebc] ss:$20 sps:$4 sm:$0xff]  }
 0x1d6   : > { %3693 = vmatprep.subr.bf16.mxu0 %v5756_v8  ;;  %3939 = vmatprep.subr.bf16.mxu1 %v5759_v9  ;;  %v5826_v50 = vld [vmem:[%s6406_s27 + $0xeb0] ss:$20 sps:$4 sm:$0xff]   ;;  %v5829_v8 = vld [vmem:[%s6406_s27 + $0xeb8] ss:$20 sps:$4 sm:$0xff]  }
 0x1d7   : > { %v5834_v9 = vld [vmem:[%s6406_s27 + $0xedc] ss:$20 sps:$4 sm:$0xff]  }
 0x1d9   : > { %3694 = vmatpush1.bf16.msra.mxu0 %v5754_v10  ;;  %3940 = vmatpush1.bf16.msra.mxu1 %v5757_v11  ;;  %v5837_v10 = vld [vmem:[%s6406_s27 + $0xee4] ss:$20 sps:$4 sm:$0xff]  }
 0x1da   : > { %3695 = vmatprep.subr.bf16.mxu0 %v5762_v12  ;;  %3941 = vmatprep.subr.bf16.mxu1 %v5765_v14  ;;  %v5832_v11 = vld [vmem:[%s6406_s27 + $0xed8] ss:$20 sps:$4 sm:$0xff]   ;;  %v5835_v12 = vld [vmem:[%s6406_s27 + $0xee0] ss:$20 sps:$4 sm:$0xff]   ;;  %v5839_v14 = vld [vmem:[%s6406_s27 + $0x150] ss:$20 sps:$4 sm:$0xff]  }
 0x1dd   : > { %3696 = vmatpush1.bf16.msra.mxu0 %v5760_v15  ;;  %3942 = vmatpush1.bf16.msra.mxu1 %v5763_v16  ;;  %v5840_v15 = vld [vmem:[%s6406_s27 + $0x3d0] ss:$20 sps:$4 sm:$0xff]  }
 0x1de   : > { %3697 = vmatprep.subr.bf16.mxu0 %v5768_v17  ;;  %3943 = vmatprep.subr.bf16.mxu1 %v5771_v19  ;;  %v5841_v16 = vld [vmem:[%s6406_s27 + $0x10] ss:$20 sps:$4 sm:$0xff]   ;;  %v5843_v19 = vld [vmem:[%s6406_s27 + $0x178] ss:$20 sps:$4 sm:$0xff]  }
 0x1df   : > { %v5842_v17 = vld [vmem:[%s6406_s27 + $0x290] ss:$20 sps:$4 sm:$0xff]  }
 0x1e1   : > { %3698 = vmatpush1.bf16.msra.mxu0 %v5766_v20  ;;  %3944 = vmatpush1.bf16.msra.mxu1 %v5769_v21  ;;  %v5844_v20 = vld [vmem:[%s6406_s27 + $0x3f8] ss:$20 sps:$4 sm:$0xff]  }
 0x1e2   : > { %3699 = vmatprep.subr.bf16.mxu0 %v5774_v22  ;;  %3945 = vmatprep.subr.bf16.mxu1 %v5777_v24  ;;  %v5845_v21 = vld [vmem:[%s6406_s27 + $0x38] ss:$20 sps:$4 sm:$0xff]   ;;  %v5847_v24 = vld [vmem:[%s6406_s27 + $0x1a0] ss:$20 sps:$4 sm:$0xff]  }
 0x1e3   : > { %v5846_v22 = vld [vmem:[%s6406_s27 + $0x2b8] ss:$20 sps:$4 sm:$0xff]  }
 0x1e5   : > { %3700 = vmatpush1.bf16.msra.mxu0 %v5772_v25  ;;  %3946 = vmatpush1.bf16.msra.mxu1 %v5775_v28  ;;  %v5848_v25 = vld [vmem:[%s6406_s27 + $0x420] ss:$20 sps:$4 sm:$0xff]  }
 0x1e6   : > { %3701 = vmatprep.subr.bf16.mxu0 %v5780_v29  ;;  %3947 = vmatprep.subr.bf16.mxu1 %v5783_v30  ;;  %v5849_v28 = vld [vmem:[%s6406_s27 + $0x60] ss:$20 sps:$4 sm:$0xff]   ;;  %v5851_v30 = vld [vmem:[%s6406_s27 + $0x1c8] ss:$20 sps:$4 sm:$0xff]  }
 0x1e7   : > { %v5850_v29 = vld [vmem:[%s6406_s27 + $0x2e0] ss:$20 sps:$4 sm:$0xff]  }
 0x1e9   : > { %3702 = vmatpush1.bf16.msra.mxu0 %v5778_v31  ;;  %3948 = vmatpush1.bf16.msra.mxu1 %v5781_v32  ;;  %v5852_v31 = vld [vmem:[%s6406_s27 + $0x448] ss:$20 sps:$4 sm:$0xff]  }
 0x1ea   : > { %3703 = vmatprep.subr.bf16.mxu0 %v5786_v33  ;;  %3949 = vmatprep.subr.bf16.mxu1 %v5789_v35  ;;  %v5853_v32 = vld [vmem:[%s6406_s27 + $0x88] ss:$20 sps:$4 sm:$0xff]   ;;  %v5856_v33 = vld [vmem:[%s6406_s27 + $0x470] ss:$20 sps:$4 sm:$0xff]  }
 0x1eb   : > { %v5857_v35 = vld [vmem:[%s6406_s27 + $0xb0] ss:$20 sps:$4 sm:$0xff]  }
 0x1ed   : > { %3704 = vmatpush1.bf16.msra.mxu0 %v5784_v23  ;;  %3950 = vmatpush1.bf16.msra.mxu1 %v5787_v36  ;;  %v5858_v23 = vld [vmem:[%s6406_s27 + $0x330] ss:$20 sps:$4 sm:$0xff]   ;;  %v5859_v36 = vld [vmem:[%s6406_s27 + $0x218] ss:$20 sps:$4 sm:$0xff]  }
 0x1ee   : > { %3705 = vmatprep.subr.bf16.mxu0 %v5792_v37  ;;  %3951 = vmatprep.subr.bf16.mxu1 %v5795_v39  ;;  %v5860_v37 = vld [vmem:[%s6406_s27 + $0x498] ss:$20 sps:$4 sm:$0xff]  }
 0x1ef   : > { %v5861_v39 = vld [vmem:[%s6406_s27 + $0xd8] ss:$20 sps:$4 sm:$0xff]  }
 0x1f1   : > { %3706 = vmatpush1.bf16.msra.mxu0 %v5790_v40  ;;  %3952 = vmatpush1.bf16.msra.mxu1 %v5793_v41  ;;  %v5862_v40 = vld [vmem:[%s6406_s27 + $0x358] ss:$20 sps:$4 sm:$0xff]   ;;  %v5863_v41 = vld [vmem:[%s6406_s27 + $0x240] ss:$20 sps:$4 sm:$0xff]  }
 0x1f2   : > { %3707 = vmatprep.subr.bf16.mxu0 %v5798_v43  ;;  %3953 = vmatprep.subr.bf16.mxu1 %v5801_v45  ;;  %v5864_v43 = vld [vmem:[%s6406_s27 + $0x4c0] ss:$20 sps:$4 sm:$0xff]  }
 0x1f3   : > { %v5865_v45 = vld [vmem:[%s6406_s27 + $0x100] ss:$20 sps:$4 sm:$0xff]  }
 0x1f5   : > { %3708 = vmatpush1.bf16.msra.mxu0 %v5796_v46  ;;  %3954 = vmatpush1.bf16.msra.mxu1 %v5799_v48  ;;  %v5866_v46 = vld [vmem:[%s6406_s27 + $0x380] ss:$20 sps:$4 sm:$0xff]   ;;  %v5867_v48 = vld [vmem:[%s6406_s27 + $0x268] ss:$20 sps:$4 sm:$0xff]  }
 0x1f6   : > { %3709 = vmatprep.subr.bf16.mxu0 %v5804_v49  ;;  %3955 = vmatprep.subr.bf16.mxu1 %v5807_v51  ;;  %v5868_v49 = vld [vmem:[%s6406_s27 + $0x4e8] ss:$20 sps:$4 sm:$0xff]  }
 0x1f7   : > { %v5869_v51 = vld [vmem:[%s6406_s27 + $0x128] ss:$20 sps:$4 sm:$0xff]  }
 0x1f9   : > { %3710 = vmatpush1.bf16.msra.mxu0 %v5802_v52  ;;  %3956 = vmatpush1.bf16.msra.mxu1 %v5805_v53  ;;  %v5870_v52 = vld [vmem:[%s6406_s27 + $0x3a8] ss:$20 sps:$4 sm:$0xff]   ;;  %v5871_v53 = vld [vmem:[%s6406_s27 + $0x650] ss:$20 sps:$4 sm:$0xff]  }
 0x1fa   : > { %3711 = vmatprep.subr.bf16.mxu0 %v5810_v56  ;;  %3957 = vmatprep.subr.bf16.mxu1 %v5813_v57  ;;  %v5872_v56 = vld [vmem:[%s6406_s27 + $0x8d0] ss:$20 sps:$4 sm:$0xff]  }
 0x1fb   : > { %v5873_v57 = vld [vmem:[%s6406_s27 + $0x510] ss:$20 sps:$4 sm:$0xff]  }
 0x1fd   : > { %3712 = vmatpush1.bf16.msra.mxu0 %v5808_v58  ;;  %3958 = vmatpush1.bf16.msra.mxu1 %v5811_v60  ;;  %v5874_v58 = vld [vmem:[%s6406_s27 + $0x790] ss:$20 sps:$4 sm:$0xff]   ;;  %v5875_v60 = vld [vmem:[%s6406_s27 + $0x678] ss:$20 sps:$4 sm:$0xff]  }
 0x1fe   : > { %3713 = vmatprep.subr.bf16.mxu0 %v5816_v61  ;;  %3959 = vmatprep.subr.bf16.mxu1 %v5819_v62  ;;  %v5876_v61 = vld [vmem:[%s6406_s27 + $0x8f8] ss:$20 sps:$4 sm:$0xff]  }
 0x1ff   : > { %v5877_v62 = vld [vmem:[%s6406_s27 + $0x538] ss:$20 sps:$4 sm:$0xff]  }
 0x201   : > { %3714 = vmatpush1.bf16.msra.mxu0 %v5814_v63  ;;  %3960 = vmatpush1.bf16.msra.mxu1 %v5817_v0  ;;  %v5878_v63 = vld [vmem:[%s6406_s27 + $0x7b8] ss:$20 sps:$4 sm:$0xff]   ;;  %v5879_v0 = vld [vmem:[%s6406_s27 + $0x6a0] ss:$20 sps:$4 sm:$0xff]  }
 0x202   : > { %3715 = vmatprep.subr.bf16.mxu0 %v5822_v1  ;;  %3961 = vmatprep.subr.bf16.mxu1 %v5825_v2  ;;  %v5880_v1 = vld [vmem:[%s6406_s27 + $0x920] ss:$20 sps:$4 sm:$0xff]   ;;  %v5883_v2 = vld [vmem:[%s6406_s27 + $0x6c8] ss:$20 sps:$4 sm:$0xff]  }
 0x205   : > { %3716 = vmatpush1.bf16.msra.mxu0 %v5820_v4  ;;  %3962 = vmatpush1.bf16.msra.mxu1 %v5823_v42  ;;  %v5884_v4 = vld [vmem:[%s6406_s27 + $0x948] ss:$20 sps:$4 sm:$0xff]  }
 0x206   : > { %3717 = vmatprep.subr.bf16.mxu0 %v5828_v5  ;;  %3963 = vmatprep.subr.bf16.mxu1 %v5831_v6  ;;  %v5885_v42 = vld [vmem:[%s6406_s27 + $0x588] ss:$20 sps:$4 sm:$0xff]   ;;  %v5888_v5 = vld [vmem:[%s6406_s27 + $0x970] ss:$20 sps:$4 sm:$0xff]  }
 0x207   : > { %v5889_v6 = vld [vmem:[%s6406_s27 + $0x5b0] ss:$20 sps:$4 sm:$0xff]  }
 0x209   : > { %3718 = vmatpush1.bf16.msra.mxu0 %v5826_v50  ;;  %3964 = vmatpush1.bf16.msra.mxu1 %v5829_v8  ;;  %v5890_v50 = vld [vmem:[%s6406_s27 + $0x830] ss:$20 sps:$4 sm:$0xff]   ;;  %v5891_v8 = vld [vmem:[%s6406_s27 + $0x718] ss:$20 sps:$4 sm:$0xff]  }
 0x20a   : > { %3719 = vmatprep.subr.bf16.mxu0 %v5834_v9  ;;  %3965 = vmatprep.subr.bf16.mxu1 %v5837_v10  ;;  %v5892_v9 = vld [vmem:[%s6406_s27 + $0x998] ss:$20 sps:$4 sm:$0xff]  }
 0x20b   : > { %v5893_v10 = vld [vmem:[%s6406_s27 + $0x5d8] ss:$20 sps:$4 sm:$0xff]  }
 0x20d   : > { %3720 = vmatpush1.bf16.msra.mxu0 %v5832_v11  ;;  %3966 = vmatpush1.bf16.msra.mxu1 %v5835_v12  ;;  %v5894_v11 = vld [vmem:[%s6406_s27 + $0x858] ss:$20 sps:$4 sm:$0xff]   ;;  %v5895_v12 = vld [vmem:[%s6406_s27 + $0x740] ss:$20 sps:$4 sm:$0xff]  }
 0x20e   : > { %4971 = vmatprep.subr.bf16.mxu0 %v5839_v14  ;;  %4993 = vmatprep.subr.bf16.mxu1 %v5840_v15  ;;  %v5896_v14 = vld [vmem:[%s6406_s27 + $0x9c0] ss:$20 sps:$4 sm:$0xff]  }
 0x20f   : > { %v5897_v15 = vld [vmem:[%s6406_s27 + $0x600] ss:$20 sps:$4 sm:$0xff]  }
 0x210   : > { %3722 = vmatmul.mubr.bf16.vlgmr.msra.gmra.mrb[0].mxu0 %v6832_v3  ;;  %3968 = vmatmul.mubr.bf16.vlgmr.msra.gmra.mrb[0].mxu1 %v6832_v3 }
 0x211   : > { %4972 = vmatpush3.bf16.msra.mxu0 %v5841_v16  ;;  %4994 = vmatpush3.bf16.msra.mxu1 %v5842_v17  ;;  %v5898_v16 = vld [vmem:[%s6406_s27 + $0x880] ss:$20 sps:$4 sm:$0xff]   ;;  %v5899_v17 = vld [vmem:[%s6406_s27 + $0x768] ss:$20 sps:$4 sm:$0xff]  }
 0x212   : > { %4973 = vmatprep.subr.bf16.mxu0 %v5843_v19  ;;  %4995 = vmatprep.subr.bf16.mxu1 %v5844_v20  ;;  %v5900_v19 = vld [vmem:[%s6406_s27 + $0x9e8] ss:$20 sps:$4 sm:$0xff]  }
 0x213   : > { %4008 = vmatprep.mubr.bf16.mxu0 %v6498_v59  ;;  %4048 = vmatprep.mubr.bf16.mxu1 %v6527_v18  ;;  %v5854_v59 = vld [vmem:[%s6406_s27 + $0x308] ss:$20 sps:$4 sm:$0xff]   ;;  %v5855_v18 = vld [vmem:[%s6406_s27 + $0x1f0] ss:$20 sps:$4 sm:$0xff]  }
 0x214   : > { %v5901_v20 = vld [vmem:[%s6406_s27 + $0x628] ss:$20 sps:$4 sm:$0xff]  }
 0x215   : > { %4974 = vmatpush3.bf16.msra.mxu0 %v5845_v21  ;;  %4996 = vmatpush3.bf16.msra.mxu1 %v5846_v22  ;;  %v5902_v21 = vld [vmem:[%s6406_s27 + $0x8a8] ss:$20 sps:$4 sm:$0xff]   ;;  %v5903_v22 = vld [vmem:[%s6406_s27 + $0xb50] ss:$20 sps:$4 sm:$0xff]  }
 0x216   : > { %4975 = vmatprep.subr.bf16.mxu0 %v5847_v24  ;;  %4997 = vmatprep.subr.bf16.mxu1 %v5848_v25  ;;  %v5904_v24 = vld [vmem:[%s6406_s27 + $0xdd0] ss:$20 sps:$4 sm:$0xff]  }
 0x217   : > { %v5905_v25 = vld [vmem:[%s6406_s27 + $0xa10] ss:$20 sps:$4 sm:$0xff]  }
 0x219   : > { %4976 = vmatpush3.bf16.msra.mxu0 %v5849_v28  ;;  %4998 = vmatpush3.bf16.msra.mxu1 %v5850_v29  ;;  %v5906_v28 = vld [vmem:[%s6406_s27 + $0xc90] ss:$20 sps:$4 sm:$0xff]   ;;  %v5907_v29 = vld [vmem:[%s6406_s27 + $0xb78] ss:$20 sps:$4 sm:$0xff]  }
 0x21a   : > { %4977 = vmatprep.subr.bf16.mxu0 %v5851_v30  ;;  %4999 = vmatprep.subr.bf16.mxu1 %v5852_v31  ;;  %v5908_v30 = vld [vmem:[%s6406_s27 + $0xdf8] ss:$20 sps:$4 sm:$0xff]  }
 0x21b   : > { %v5909_v31 = vld [vmem:[%s6406_s27 + $0xa38] ss:$20 sps:$4 sm:$0xff]  }
 0x21d   : > { %4978 = vmatpush3.bf16.msra.mxu0 %v5853_v32  ;;  %5000 = vmatpush3.bf16.msra.mxu1 %v5854_v59  ;;  %v5910_v32 = vld [vmem:[%s6406_s27 + $0xcb8] ss:$20 sps:$4 sm:$0xff]   ;;  %v5911_v59 = vld [vmem:[%s6406_s27 + $0xba0] ss:$20 sps:$4 sm:$0xff]  }
 0x21e   : > { %4979 = vmatprep.subr.bf16.mxu0 %v5855_v18  ;;  %5001 = vmatprep.subr.bf16.mxu1 %v5856_v33  ;;  %v5912_v18 = vld [vmem:[%s6406_s27 + $0xe20] ss:$20 sps:$4 sm:$0xff]   ;;  %v5915_v33 = vld [vmem:[%s6406_s27 + $0xbc8] ss:$20 sps:$4 sm:$0xff]  }
 0x221   : > { %4980 = vmatpush3.bf16.msra.mxu0 %v5857_v35  ;;  %5002 = vmatpush3.bf16.msra.mxu1 %v5858_v23  ;;  %v5916_v35 = vld [vmem:[%s6406_s27 + $0xe48] ss:$20 sps:$4 sm:$0xff]  }
 0x222   : > { %4981 = vmatprep.subr.bf16.mxu0 %v5859_v36  ;;  %5003 = vmatprep.subr.bf16.mxu1 %v5860_v37  ;;  %v5917_v23 = vld [vmem:[%s6406_s27 + $0xa88] ss:$20 sps:$4 sm:$0xff]   ;;  %v5920_v36 = vld [vmem:[%s6406_s27 + $0xe70] ss:$20 sps:$4 sm:$0xff]  }
 0x223   : > { %v5921_v37 = vld [vmem:[%s6406_s27 + $0xab0] ss:$20 sps:$4 sm:$0xff]  }
 0x225   : > { %4982 = vmatpush3.bf16.msra.mxu0 %v5861_v39  ;;  %5004 = vmatpush3.bf16.msra.mxu1 %v5862_v40  ;;  %v5922_v39 = vld [vmem:[%s6406_s27 + $0xd30] ss:$20 sps:$4 sm:$0xff]   ;;  %v5923_v40 = vld [vmem:[%s6406_s27 + $0xc18] ss:$20 sps:$4 sm:$0xff]  }
 0x226   : > { %4983 = vmatprep.subr.bf16.mxu0 %v5863_v41  ;;  %5005 = vmatprep.subr.bf16.mxu1 %v5864_v43  ;;  %v5924_v41 = vld [vmem:[%s6406_s27 + $0xe98] ss:$20 sps:$4 sm:$0xff]  }
 0x227   : > { %v5925_v43 = vld [vmem:[%s6406_s27 + $0xad8] ss:$20 sps:$4 sm:$0xff]  }
 0x229   : > { %4984 = vmatpush3.bf16.msra.mxu0 %v5865_v45  ;;  %5006 = vmatpush3.bf16.msra.mxu1 %v5866_v46  ;;  %v5926_v45 = vld [vmem:[%s6406_s27 + $0xd58] ss:$20 sps:$4 sm:$0xff]   ;;  %v5927_v46 = vld [vmem:[%s6406_s27 + $0xc40] ss:$20 sps:$4 sm:$0xff]  }
 0x22a   : > { %4985 = vmatprep.subr.bf16.mxu0 %v5867_v48  ;;  %5007 = vmatprep.subr.bf16.mxu1 %v5868_v49  ;;  %v5928_v48 = vld [vmem:[%s6406_s27 + $0xec0] ss:$20 sps:$4 sm:$0xff]  }
 0x22b   : > { %v5929_v49 = vld [vmem:[%s6406_s27 + $0xb00] ss:$20 sps:$4 sm:$0xff]  }
 0x22d   : > { %4986 = vmatpush3.bf16.msra.mxu0 %v5869_v51  ;;  %5008 = vmatpush3.bf16.msra.mxu1 %v5870_v52  ;;  %v5930_v51 = vld [vmem:[%s6406_s27 + $0xd80] ss:$20 sps:$4 sm:$0xff]   ;;  %v5931_v52 = vld [vmem:[%s6406_s27 + $0xc68] ss:$20 sps:$4 sm:$0xff]  }
 0x22e   : > { %5015 = vmatprep.subr.bf16.mxu0 %v5871_v53  ;;  %5037 = vmatprep.subr.bf16.mxu1 %v5872_v56  ;;  %v5932_v53 = vld [vmem:[%s6406_s27 + $0xee8] ss:$20 sps:$4 sm:$0xff]  }
 0x22f   : > { %v5933_v56 = vld [vmem:[%s6406_s27 + $0xb28] ss:$20 sps:$4 sm:$0xff]  }
 0x230   : > { %4009 = vmatmul.mubr.bf16.vlgmr.msra.gmra.mrb[4].mxu0 %v6491_v55  ;;  %4049 = vmatmul.mubr.bf16.vlgmr.msra.gmra.mrb[4].mxu1 %v6519_v13  ;;  %v5881_v55 = vld [vmem:[%s6406_s27 + $0x560] ss:$20 sps:$4 sm:$0xff]  }
 0x231   : > { %5016 = vmatpush3.bf16.msra.mxu0 %v5873_v57  ;;  %5038 = vmatpush3.bf16.msra.mxu1 %v5874_v58  ;;  %v5882_v13 = vld [vmem:[%s6406_s27 + $0x7e0] ss:$20 sps:$4 sm:$0xff]   ;;  %v5934_v57 = vld [vmem:[%s6406_s27 + $0xda8] ss:$20 sps:$4 sm:$0xff]  }
 0x232   : > { %5017 = vmatprep.subr.bf16.mxu0 %v5875_v60  ;;  %5039 = vmatprep.subr.bf16.mxu1 %v5876_v61  ;;  %v340_v61 = vld [vmem:[#allocation2] sm:$0xff] }
 0x233   : > { %4088 = vmatprep.mubr.bf16.mxu0 %v6608_v27  ;;  %4128 = vmatprep.mubr.bf16.mxu1 %v6683_v38  ;;  %v5886_v27 = vld [vmem:[%s6406_s27 + $0x808] ss:$20 sps:$4 sm:$0xff]   ;;  %v5887_v38 = vld [vmem:[%s6406_s27 + $0x6f0] ss:$20 sps:$4 sm:$0xff]  }
 0x235   : > { %5018 = vmatpush3.bf16.msra.mxu0 %v5877_v62  ;;  %5040 = vmatpush3.bf16.msra.mxu1 %v5878_v63  ;;  %v341_v63 = vld [vmem:[#allocation2 + $0x8] sm:$0xff] }
 0x236   : > { %5019 = vmatprep.subr.bf16.mxu0 %v5879_v0  ;;  %5041 = vmatprep.subr.bf16.mxu1 %v5880_v1 }
 0x239   : > { %5020 = vmatpush3.bf16.msra.mxu0 %v5881_v55  ;;  %5042 = vmatpush3.bf16.msra.mxu1 %v5882_v13 }
 0x23a   : > { %5021 = vmatprep.subr.bf16.mxu0 %v5883_v2  ;;  %5043 = vmatprep.subr.bf16.mxu1 %v5884_v4 }
 0x23d   : > { %5022 = vmatpush3.bf16.msra.mxu0 %v5885_v42  ;;  %5044 = vmatpush3.bf16.msra.mxu1 %v5886_v27 }
 0x23e   : > { %5023 = vmatprep.subr.bf16.mxu0 %v5887_v38  ;;  %5045 = vmatprep.subr.bf16.mxu1 %v5888_v5 }
 0x241   : > { %5024 = vmatpush3.bf16.msra.mxu0 %v5889_v6  ;;  %5046 = vmatpush3.bf16.msra.mxu1 %v5890_v50 }
 0x242   : > { %5025 = vmatprep.subr.bf16.mxu0 %v5891_v8  ;;  %5047 = vmatprep.subr.bf16.mxu1 %v5892_v9 }
 0x245   : > { %5026 = vmatpush3.bf16.msra.mxu0 %v5893_v10  ;;  %5048 = vmatpush3.bf16.msra.mxu1 %v5894_v11 }
 0x246   : > { %5027 = vmatprep.subr.bf16.mxu0 %v5895_v12  ;;  %5049 = vmatprep.subr.bf16.mxu1 %v5896_v14 }
 0x249   : > { %5028 = vmatpush3.bf16.msra.mxu0 %v5897_v15  ;;  %5050 = vmatpush3.bf16.msra.mxu1 %v5898_v16 }
 0x24a   : > { %5029 = vmatprep.subr.bf16.mxu0 %v5899_v17  ;;  %5051 = vmatprep.subr.bf16.mxu1 %v5900_v19 }
 0x24d   : > { %5030 = vmatpush3.bf16.msra.mxu0 %v5901_v20  ;;  %5052 = vmatpush3.bf16.msra.mxu1 %v5902_v21 }
 0x24e   : > { %5059 = vmatprep.subr.bf16.mxu0 %v5903_v22  ;;  %5081 = vmatprep.subr.bf16.mxu1 %v5904_v24 }
 0x250   : > { %4089 = vmatmul.mubr.bf16.vlgmr.msra.gmra.mrb[8].mxu0 %v6602_v26  ;;  %4129 = vmatmul.mubr.bf16.vlgmr.msra.gmra.mrb[8].mxu1 %v6675_v34  ;;  %v5913_v26 = vld [vmem:[%s6406_s27 + $0xa60] ss:$20 sps:$4 sm:$0xff]  }
 0x251   : > { %5060 = vmatpush3.bf16.msra.mxu0 %v5905_v25  ;;  %5082 = vmatpush3.bf16.msra.mxu1 %v5906_v28  ;;  %v5914_v34 = vld [vmem:[%s6406_s27 + $0xce0] ss:$20 sps:$4 sm:$0xff]  }
 0x252   : > { %5061 = vmatprep.subr.bf16.mxu0 %v5907_v29  ;;  %5083 = vmatprep.subr.bf16.mxu1 %v5908_v30 }
 0x253   : > { %4168 = vmatprep.mubr.bf16.mxu0 %v6763_v54  ;;  %4208 = vmatprep.mubr.bf16.mxu1 %v6840_v7  ;;  %v5918_v54 = vld [vmem:[%s6406_s27 + $0xd08] ss:$20 sps:$4 sm:$0xff]   ;;  %v5919_v7 = vld [vmem:[%s6406_s27 + $0xbf0] ss:$20 sps:$4 sm:$0xff]  }
 0x255   : > { %5062 = vmatpush3.bf16.msra.mxu0 %v5909_v31  ;;  %5084 = vmatpush3.bf16.msra.mxu1 %v5910_v32 }
 0x256   : > { %5063 = vmatprep.subr.bf16.mxu0 %v5911_v59  ;;  %5085 = vmatprep.subr.bf16.mxu1 %v5912_v18 }
 0x259   : > { %5064 = vmatpush3.bf16.msra.mxu0 %v5913_v26  ;;  %5086 = vmatpush3.bf16.msra.mxu1 %v5914_v34 }
 0x25a   : > { %5065 = vmatprep.subr.bf16.mxu0 %v5915_v33  ;;  %5087 = vmatprep.subr.bf16.mxu1 %v5916_v35 }
 0x25d   : > { %5066 = vmatpush3.bf16.msra.mxu0 %v5917_v23  ;;  %5088 = vmatpush3.bf16.msra.mxu1 %v5918_v54 }
 0x25e   : > { %5067 = vmatprep.subr.bf16.mxu0 %v5919_v7  ;;  %5089 = vmatprep.subr.bf16.mxu1 %v5920_v36  ;;  %v342_v36 = vld [vmem:[#allocation2 + $0x10] sm:$0xf] }
 0x261   : > { %5068 = vmatpush3.bf16.msra.mxu0 %v5921_v37  ;;  %5090 = vmatpush3.bf16.msra.mxu1 %v5922_v39 }
 0x262   : > { %5069 = vmatprep.subr.bf16.mxu0 %v5923_v40  ;;  %5091 = vmatprep.subr.bf16.mxu1 %v5924_v41  ;;  %v4241_v40 = vsub.s32 (!%p4963_p8), 0, %v6476_v44  ;;  %v4245_v41 = vsub.s32 (!%p4963_p8), 1, %v6476_v44 }
 0x265   : > { %5070 = vmatpush3.bf16.msra.mxu0 %v5925_v43  ;;  %5092 = vmatpush3.bf16.msra.mxu1 %v5926_v45  ;;  %v4237_v43 = vld [vmem:[%s270_s18] sm:$0x1f] (!%p4963_p8)  ;;  %v4249_v45 = vsub.s32 (!%p4963_p8), 2, %v6476_v44 }
 0x266   : > { %5071 = vmatprep.subr.bf16.mxu0 %v5927_v46  ;;  %5093 = vmatprep.subr.bf16.mxu1 %v5928_v48  ;;  %v4253_v46 = vsub.s32 (!%p4963_p8), 3, %v6476_v44  ;;  %v4257_v48 = vsub.s32 (!%p4963_p8), 4, %v6476_v44 }
 0x269   : > { %5072 = vmatpush3.bf16.msra.mxu0 %v5929_v49  ;;  %5094 = vmatpush3.bf16.msra.mxu1 %v5930_v51  ;;  %v4242_v51 = vrot.slane (!%p4963_p8), %v4237_v43, %v4241_v40 }
 0x26a   : > { %5073 = vmatprep.subr.bf16.mxu0 %v5931_v52  ;;  %5095 = vmatprep.subr.bf16.mxu1 %v5932_v53  ;;  %v4246_v52 = vrot.slane (!%p4963_p8), %v4237_v43, %v4245_v41 }
 0x26d   : > { %5074 = vmatpush3.bf16.msra.mxu0 %v5933_v56  ;;  %5096 = vmatpush3.bf16.msra.mxu1 %v5934_v57  ;;  %v4250_v56 = vrot.slane (!%p4963_p8), %v4237_v43, %v4249_v45  ;;  %v4254_v57 = vrot.slane (!%p4963_p8), %v4237_v43, %v4253_v46 }
 0x270   : > { %4169 = vmatmul.mubr.bf16.vlgmr.msra.gmra.mrb[12].mxu0 %v6754_v47  ;;  %4209 = vmatmul.mubr.bf16.vlgmr.msra.gmra.mrb[12].mxu1 %v6832_v3 }
 0x2e3   : > { %v3723_v58 = vpop.f32.mrb[0].mxu0  ;;  %v3969_v60 = vpop.f32.mrb[0].mxu1 }
 0x2e4   : > { %v3725_v62 = vpop.f32.mrb[1].mxu0  ;;  %v3971_v0 = vpop.f32.mrb[1].mxu1 }
 0x2e5   : > { %v4220_v1 = vcombine.low %v3723_v58, %v3725_v62  ;;  %v4221_v55 = vcombine.low %v3969_v60, %v3971_v0  ;;  %v3727_v13 = vpop.f32.mrb[2].mxu0  ;;  %v3973_v2 = vpop.f32.mrb[2].mxu1  ;;  %v4258_v58 = vrot.slane (!%p4963_p8), %v4237_v43, %v4257_v48  ;;  %v4261_v62 = vcombine.low (!%p4963_p8), %v4250_v56, %v4254_v57 }
 0x2e6   : > { %v3728_v4 = vpop.f32.mrb[3].mxu0  ;;  %v3974_v42 = vpop.f32.mrb[3].mxu1 }
 0x2e7   : > { %v4224_v27 = vadd.f32 %v4220_v1, %v340_v61  ;;  %v4225_v38 = vadd.f32 %v4221_v55, %v341_v63  ;;  %v4260_v61 = vcombine.low (!%p4963_p8), %v4242_v51, %v4246_v52 }
 0x2e9   : > { %4227 = vst [vmem:[#allocation2] sm:$0xff] %v4224_v27  ;;  %4228 = vst [vmem:[#allocation2 + $0x8] sm:$0xff] %v4225_v38 }
 0x2f0   : > { %v4234_v53 = vld [vmem:[#allocation2] sm:$0xff] (!%p4963_p8)  ;;  %v4235_v60 = vld [vmem:[#allocation2 + $0x8] sm:$0xff] (!%p4963_p8) }
 0x2f1   : > { %v4264_v0 = vadd.f32 (!%p4963_p8), %v4260_v61, %v4234_v53  ;;  %v4265_v1 = vadd.f32 (!%p4963_p8), %v4261_v62, %v4235_v60 }
 0x2f3   : > { %v4964_v13 = vmul.f32 (!%p4963_p8), -1.442695, %v4264_v0  ;;  %v4965_v2 = vmul.f32 (!%p4963_p8), -1.442695, %v4265_v1 }
 0x303   : > { %v4987_v5 = vpop.f32.mrb[4].mxu0  ;;  %v5009_v47 = vpop.f32.mrb[4].mxu1 }
 0x304   : > { %v4988_v6 = vpop.f32.mrb[5].mxu0  ;;  %v5010_v3 = vpop.f32.mrb[5].mxu1 }
 0x305   : > { %v4989_v50 = vadd.f32 %v4988_v6, %v4987_v5  ;;  %v5011_v8 = vadd.f32 %v5010_v3, %v5009_v47  ;;  %v4990_v9 = vpop.f32.mrb[6].mxu0  ;;  %v5012_v10 = vpop.f32.mrb[6].mxu1  ;;  %v4288_v47 = vld [vmem:[%s279_s17] sm:$0x1f] (!%p4963_p8) }
 0x306   : > { %v4991_v11 = vpop.f32.mrb[7].mxu0  ;;  %v5013_v12 = vpop.f32.mrb[7].mxu1  ;;  %v4293_v6 = vrot.slane (!%p4963_p8), %v4288_v47, %v4241_v40  ;;  %v4297_v3 = vrot.slane (!%p4963_p8), %v4288_v47, %v4245_v41 }
 0x307   : > { %v4051_v14 = vadd.f32 %v5011_v8, %v4989_v50  ;;  %v4301_v50 = vrot.slane (!%p4963_p8), %v4288_v47, %v4249_v45  ;;  %v4305_v8 = vrot.slane (!%p4963_p8), %v4288_v47, %v4253_v46 }
 0x308   : > { %v4311_v10 = vcombine.low (!%p4963_p8), %v4293_v6, %v4297_v3 }
 0x309   : > { %v4312_v12 = vcombine.low (!%p4963_p8), %v4301_v50, %v4305_v8 }
 0x323   : > { %v5031_v15 = vpop.f32.mrb[8].mxu0  ;;  %v5053_v16 = vpop.f32.mrb[8].mxu1 }
 0x324   : > { %v5032_v17 = vpop.f32.mrb[9].mxu0  ;;  %v5054_v19 = vpop.f32.mrb[9].mxu1 }
 0x325   : > { %v5033_v20 = vadd.f32 %v5032_v17, %v5031_v15  ;;  %v5055_v21 = vadd.f32 %v5054_v19, %v5053_v16  ;;  %v5034_v22 = vpop.f32.mrb[10].mxu0  ;;  %v5056_v24 = vpop.f32.mrb[10].mxu1  ;;  %v4309_v19 = vrot.slane (!%p4963_p8), %v4288_v47, %v4257_v48 }
 0x326   : > { %v5035_v25 = vpop.f32.mrb[11].mxu0  ;;  %v5057_v28 = vpop.f32.mrb[11].mxu1 }
 0x327   : > { %v4091_v29 = vadd.f32 %v5033_v20, %v4051_v14 }
 0x329   : > { %v4131_v30 = vadd.f32 %v5055_v21, %v4091_v29 }
 0x343   : > { %v5075_v31 = vpop.f32.mrb[12].mxu0  ;;  %v5097_v32 = vpop.f32.mrb[12].mxu1 }
 0x344   : > { %v5076_v59 = vpop.f32.mrb[13].mxu0  ;;  %v5098_v18 = vpop.f32.mrb[13].mxu1 }
 0x345   : > { %v5077_v26 = vadd.f32 %v5076_v59, %v5075_v31  ;;  %v5099_v34 = vadd.f32 %v5098_v18, %v5097_v32  ;;  %v5078_v33 = vpop.f32.mrb[14].mxu0  ;;  %v5100_v35 = vpop.f32.mrb[14].mxu1 }
 0x346   : > { %v5079_v23 = vpop.f32.mrb[15].mxu0  ;;  %v5101_v54 = vpop.f32.mrb[15].mxu1 }
 0x347   : > { %v4171_v7 = vadd.f32 %v5077_v26, %v4131_v30  ;;  %4233 = sbr.rel (%p4963_p8) target bundleno = 1040 (0x410), region = 56 }
 0x349   : > { %v4211_v37 = vadd.f32 %v5099_v34, %v4171_v7 }
 0x34b   : > { %v4226_v39 = vadd.f32 %v4211_v37, %v342_v36 }
 0x34d   : > { %4229 = vst [vmem:[#allocation2 + $0x10] sm:$0xf] %v4226_v39 }
 0x354   : > { %v4236_v49 = vld [vmem:[#allocation2 + $0x10] sm:$0xf] }
 0x355   : > { %v4266_v63 = vadd.f32 %v4258_v58, %v4236_v49 }
 0x357   : > { %v4966_v55 = vmul.f32 -1.442695, %v4266_v63 }
 0x359   : > { %5935 = vpow2.f32 %v4966_v55 }
 0x35a   : > { %5937 = vpow2.f32 %v4964_v13 }
 0x35b   : > { %5939 = vpow2.f32 %v4965_v2 }
 0x363   : > { %v5936_v44 = vpop.eup %5935 }
 0x364   : > { %v5938_v4 = vpop.eup %5937  ;;  %v4278_v42 = vadd.f32 1.0, %v5936_v44 }
 0x365   : > { %v5940_v27 = vpop.eup %5939  ;;  %v4276_v38 = vadd.f32 1.0, %v5938_v4 }
 0x366   : > { %v4277_v5 = vadd.f32 1.0, %v5940_v27  ;;  %5941 = vrcp.f32 %v4278_v42 }
 0x367   : > { %5943 = vrcp.f32 %v4276_v38 }
 0x368   : > { %5945 = vrcp.f32 %v4277_v5 }
 0x370   : > { %v5942_v9 = vpop.eup %5941 }
 0x371   : > { %v5944_v11 = vpop.eup %5943  ;;  %v4287_v17 = vmul.f32 %v5942_v9, %v4266_v63 }
 0x372   : > { %v5946_v14 = vpop.eup %5945  ;;  %v4285_v15 = vmul.f32 %v5944_v11, %v4264_v0 }
 0x373   : > { %v4286_v16 = vmul.f32 %v5946_v14, %v4265_v1  ;;  %v4317_v28 = vmul.f32 %v4309_v19, %v4287_v17 }
 0x374   : > { %v4315_v20 = vmul.f32 %v4311_v10, %v4285_v15 }
 0x375   : > { %v4316_v21 = vmul.f32 %v4312_v12, %v4286_v16  ;;  %v4332_v18 = vsel %vm4324_vm0, %v4317_v28, 0.0 }
 0x376   : > { %v4320_v22 = vcombine.high %v4315_v20, %v4315_v20  ;;  %v4325_v24 = vsel %vm4324_vm0, %v4315_v20, 0.0 }
 0x377   : > { %v4321_v25 = vcombine.high %v4316_v21, %v4316_v21  ;;  %v4328_v30 = vsel %vm4324_vm0, %v4316_v21, 0.0 }
 0x378   : > { %v4326_v29 = vsel %vm4324_vm0, %v4320_v22, 0.0 }
 0x379   : > { %v4327_v31 = vadd.f32 %v4326_v29, %v4325_v24  ;;  %v4330_v32 = vsel %vm4324_vm0, %v4321_v25, 0.0 }
 0x37b   : > { %v4329_v59 = vadd.f32 %v4328_v30, %v4327_v31 }
 0x37d   : > { %v4331_v26 = vadd.f32 %v4330_v32, %v4329_v59 }
 0x37f   : > { %v4333_v34 = vadd.f32 %v4332_v18, %v4331_v26 }
 0x381   : > { %4334 = vadd.xlane.f32.xlu0 %v4333_v34 }
 0x40e   : > { %v4335_v33 = vpop.xlane.xlu0 %4334 }
 0x40f   : > { %4337 = vst.msk [vmem:[%s6428_s8] sm:$0xf] %vm4336_vm1, %v4335_v33 }
 0x410 PF: > { %s20_s25 = sadd.s32 1, %s6131_s25   ;;  %s7095_s21 = sld [smem:[#allocation10_spill]] }
 0x411   : > { %p17_p10 = scmp.ge.s32.totalorder %s20_s25, 6   ;;  %s7096_s17 = sld [smem:[#allocation14_spill]] }
 0x412   : > { %s7097_s22 = sld [smem:[#allocation11_spill]]  ;;  %s7098_s20 = sld [smem:[#allocation15_spill]] }
 0x413   : > { %s7099_s2 = sld [smem:[#allocation12_spill]]  ;;  %s7100_s11 = sld [smem:[#allocation13_spill]] }
 0x414   : > { %s7101_s15 = smov %s6095_s16  ;;  %s7103_s18 = smov %s6107_s19 }
 0x415   :  { %19 = sbr.rel (!%p17_p10) target bundleno = 11 (0xb), region = 111 }
 0x416   : > { %s7102_s16 = smov %s7095_s21  ;;  %s7105_s21 = smov %s6123_s23 }
 0x418   : > { %s7104_s19 = smov %s7097_s22  ;;  %s7106_s22 = smov %s6127_s24 }
 0x419   : > { %s7107_s23 = smov %s7099_s2  ;;  %s7108_s24 = smov %s7100_s11 }
 0x41c   :  { %4357 = vsyncpa [#allocation4], 1 }
 0x41d   :  { %4359 = vsyncpa [#allocation4 + $0x1], 1 }
 0x41e   :  { %4360 = vsyncpa [#allocation6], 1 }
 0x41f   :  { %4362 = vsyncpa [#allocation6 + $0x1], 1 }

</bundles_post_ra>
